<compile_context>
chip_gen: v7x
topology: tpu7x:2x2x1
jax: 0.10.0
libtpu: 0.0.40
codegen_flags: <defaults>
</compile_context>

<pallas_src>
import functools

import jax
import jax.numpy as jnp
from jax.experimental import pallas as pl
from jax.experimental.pallas import tpu as pltpu

EPS = 1e-6


# --------------------------------------------------------------------------- #
# helpers
# --------------------------------------------------------------------------- #
def _round_up(v, m):
    return ((v + m - 1) // m) * m


def _pad_to(a, shape):
    """Zero-pad `a` up to `shape`; no-op (no HBM copy) when already that shape."""
    pads = tuple((0, t - s) for s, t in zip(a.shape, shape))
    if any(p[1] for p in pads):
        return jnp.pad(a, pads)
    return a


def _vmem_capacity_bytes():
    """Per-TensorCore VMEM capacity; conservative (v7x) fallback."""
    try:
        return int(pltpu.get_tpu_info().vmem_capacity_bytes)
    except Exception:
        return 64 * 1024 * 1024


def _vmem_limit(estimate_bytes, cap_bytes):
    """Scoped-VMEM limit derived from the actual buffer estimate, with headroom."""
    lim = max(32 << 20, 2 * estimate_bytes + (2 << 20))
    return int(min(cap_bytes - (2 << 20), lim))


def _layernorm(v, gamma, beta, h_actual, h_padded):
    """BERT-pytorch LayerNorm over the last dim (unbiased std, (std+eps) denom).

    Relies on padded columns of `v` being exactly zero by construction
    (x, W, bias, gamma, beta and z are all zero-padded), so the mean needs no
    masking and only one jnp.where is required; when H == Hp no masking at all.
    gamma is folded into the reciprocal so the epilogue is one FMA per element.
    """
    inv_n = 1.0 / h_actual
    inv_nm1 = 1.0 / (h_actual - 1)
    mean = jnp.sum(v, axis=-1, keepdims=True) * inv_n      # padded cols are 0
    if h_actual == h_padded:
        d = v - mean
    else:
        col = jax.lax.broadcasted_iota(jnp.int32, v.shape, v.ndim - 1)
        d = jnp.where(col < h_actual, v - mean, 0.0)
    var = jnp.sum(d * d, axis=-1, keepdims=True) * inv_nm1
    inv_std = pl.reciprocal(jnp.sqrt(var) + EPS, approx=True)   # EUP slot (free)
    return (gamma * inv_std) * d + beta


# --------------------------------------------------------------------------- #
# kernels
# --------------------------------------------------------------------------- #
def _ln1_w_kernel(x_ref, g_ref, b_ref, w_ref, z_ref, *, h_actual, h_padded):
    """z = LN1(x) @ W, written once per row tile in bf16 for the MXU."""
    y = _layernorm(x_ref[...], g_ref[...], b_ref[...], h_actual, h_padded)
    z = jnp.dot(y.astype(jnp.bfloat16), w_ref[...],
                preferred_element_type=jnp.float32)
    z_ref[...] = z.astype(z_ref.dtype)


def _gcn_resident_kernel(x_ref, adj_ref, z_ref, bias_ref, g2_ref, b2_ref,
                         out_ref, *, h_actual, h_padded):
    """out = LN2(x + relu(A_stripe @ z + b)); z is VMEM-resident per batch."""
    acc = jnp.dot(adj_ref[...], z_ref[...], preferred_element_type=jnp.float32)
    h = jnp.maximum(acc + bias_ref[...], 0.0)
    r = x_ref[...] + h                                      # residual (dropout=id)
    out = _layernorm(r, g2_ref[...], b2_ref[...], h_actual, h_padded)
    out_ref[...] = out.astype(out_ref.dtype)


def _gcn_streamed_kernel(x_ref, adj_ref, z_ref, bias_ref, g2_ref, b2_ref,
                         out_ref, acc_ref, *, h_actual, h_padded):
    """k-tiled A @ z accumulation; bias/ReLU/residual/LN2 only on the last k."""
    k = pl.program_id(2)

    @pl.when(k == 0)
    def _():
        acc_ref[...] = jnp.zeros_like(acc_ref)

    acc_ref[...] += jnp.dot(adj_ref[...], z_ref[...],
                            preferred_element_type=jnp.float32)

    @pl.when(k == pl.num_programs(2) - 1)
    def _():
        h = jnp.maximum(acc_ref[...] + bias_ref[...], 0.0)
        r = x_ref[...] + h
        out = _layernorm(r, g2_ref[...], b2_ref[...], h_actual, h_padded)
        out_ref[...] = out.astype(out_ref.dtype)


# --------------------------------------------------------------------------- #
# wrapper
# --------------------------------------------------------------------------- #
@functools.partial(jax.jit, static_argnames=("force_streamed",))
def transformer_block(x, adj, w, bias, g1, b1, g2, b2, *, force_streamed=False):
    """x: [B, N, H] f32, adj (inputP): [B, N, N] f32, params as (H,) or (1,H)."""
    B, N, H = x.shape
    assert H >= 2, "LayerNorm with unbiased std requires H >= 2"

    cap = _vmem_capacity_bytes()
    budget = int(cap * 0.75)                       # tiles must fit with headroom

    # ---- padded / tiled layout (lane-dense H, 128-multiple N) --------------
    Hp = _round_up(max(H, 128), 128)
    Np = _round_up(N, 128)

    xp = _pad_to(x, (B, Np, Hp))
    adjp = _pad_to(adj.astype(jnp.bfloat16), (B, Np, Np))     # cast, then pad
    wp = _pad_to(w.astype(jnp.bfloat16), (Hp, Hp))
    pad_h = lambda p: _pad_to(jnp.reshape(p, (1, -1)), (1, Hp))
    biasp, g1p, b1p, g2p, b2p = (pad_h(p) for p in (bias, g1, b1, g2, b2))

    f32, bf16 = 4, 2
    small = 12 * Hp * f32                          # bias / gamma / beta blocks

    # ---- kernel 1 tiling: biggest row tile that fits the VMEM budget -------
    tm1 = 128
    for cand in (1024, 512, 256, 128):
        if Np % cand == 0:
            est = (2 * cand * Hp * f32             # x tile  (double-buffered)
                   + 2 * cand * Hp * bf16          # z out   (double-buffered)
                   + 2 * Hp * Hp * bf16            # W       (double-buffered)
                   + small)
            if est <= budget:
                tm1 = cand
                break
    if B * (Np // tm1) < 2 and tm1 > 128:          # keep >=2 parallel blocks (v7x)
        tm1 //= 2
    est1 = (2 * tm1 * Hp * f32 + 2 * tm1 * Hp * bf16 + 2 * Hp * Hp * bf16 + small)

    # ---- kernel 2 tiling / variant selection --------------------------------
    TM = 256 if Np % 256 == 0 else 128
    if B * (Np // TM) < 2 and TM > 128:            # v7x: 2 TensorCores need 2 blocks
        TM = 128

    resident_est = (2 * TM * Hp * f32              # x tile
                    + 2 * TM * Np * bf16           # adjacency row stripe
                    + 2 * Np * Hp * bf16           # z, whole batch resident
                    + 2 * TM * Hp * f32            # out tile
                    + small)
    use_resident = (not force_streamed) and resident_est <= budget

    TK = 512 if Np % 512 == 0 else (256 if Np % 256 == 0 else 128)
    def _streamed_est(tk):
        return (2 * TM * Hp * f32 + 2 * TM * tk * bf16 + 2 * tk * Hp * bf16
                + 2 * TM * Hp * f32 + TM * Hp * f32 + small)
    while _streamed_est(TK) > budget and TK > 128:
        TK //= 2
    est2 = resident_est if use_resident else _streamed_est(TK)

    # ---- kernel 1: z = LN1(x) @ W, bf16, written once -----------------------
    z = pl.pallas_call(
        functools.partial(_ln1_w_kernel, h_actual=H, h_padded=Hp),
        out_shape=jax.ShapeDtypeStruct((B, Np, Hp), jnp.bfloat16),
        grid_spec=pltpu.PrefetchScalarGridSpec(
            num_scalar_prefetch=0,
            grid=(B, Np // tm1),
            in_specs=[
                pl.BlockSpec((pl.Squeezed(), tm1, Hp), lambda b, i: (b, i, 0)),  # x rows
                pl.BlockSpec((1, Hp), lambda b, i: (0, 0)),                      # ln1 gamma
                pl.BlockSpec((1, Hp), lambda b, i: (0, 0)),                      # ln1 beta
                pl.BlockSpec((Hp, Hp), lambda b, i: (0, 0)),                     # W (resident)
            ],
            out_specs=pl.BlockSpec((pl.Squeezed(), tm1, Hp), lambda b, i: (b, i, 0)),
        ),
        compiler_params=pltpu.CompilerParams(
            dimension_semantics=("parallel", "parallel"),
            vmem_limit_bytes=_vmem_limit(est1, cap)),
    )(xp, g1p, b1p, wp)

    # ---- kernel 2: out = LN2(x + relu(A @ z + b)) ---------------------------
    if use_resident:
        outp = pl.pallas_call(
            functools.partial(_gcn_resident_kernel, h_actual=H, h_padded=Hp),
            out_shape=jax.ShapeDtypeStruct((B, Np, Hp), x.dtype),
            grid_spec=pltpu.PrefetchScalarGridSpec(
                num_scalar_prefetch=0,
                grid=(B, Np // TM),
                in_specs=[
                    pl.BlockSpec((pl.Squeezed(), TM, Hp), lambda b, i: (b, i, 0)),  # x rows
                    pl.BlockSpec((pl.Squeezed(), TM, Np), lambda b, i: (b, i, 0)),  # adj stripe
                    pl.BlockSpec((pl.Squeezed(), Np, Hp), lambda b, i: (b, 0, 0)),  # z resident
                    pl.BlockSpec((1, Hp), lambda b, i: (0, 0)),                     # bias
                    pl.BlockSpec((1, Hp), lambda b, i: (0, 0)),                     # ln2 gamma
                    pl.BlockSpec((1, Hp), lambda b, i: (0, 0)),                     # ln2 beta
                ],
                out_specs=pl.BlockSpec((pl.Squeezed(), TM, Hp), lambda b, i: (b, i, 0)),
            ),
            compiler_params=pltpu.CompilerParams(
                dimension_semantics=("parallel", "parallel"),
                vmem_limit_bytes=_vmem_limit(est2, cap)),
        )(xp, adjp, z, biasp, g2p, b2p)
    else:
        outp = pl.pallas_call(
            functools.partial(_gcn_streamed_kernel, h_actual=H, h_padded=Hp),
            out_shape=jax.ShapeDtypeStruct((B, Np, Hp), x.dtype),
            grid_spec=pltpu.PrefetchScalarGridSpec(
                num_scalar_prefetch=0,
                grid=(B, Np // TM, Np // TK),
                in_specs=[
                    pl.BlockSpec((pl.Squeezed(), TM, Hp), lambda b, i, k: (b, i, 0)),  # x rows
                    pl.BlockSpec((pl.Squeezed(), TM, TK), lambda b, i, k: (b, i, k)),  # adj tile
                    pl.BlockSpec((pl.Squeezed(), TK, Hp), lambda b, i, k: (b, k, 0)),  # z tile
                    pl.BlockSpec((1, Hp), lambda b, i, k: (0, 0)),                     # bias
                    pl.BlockSpec((1, Hp), lambda b, i, k: (0, 0)),                     # ln2 gamma
                    pl.BlockSpec((1, Hp), lambda b, i, k: (0, 0)),                     # ln2 beta
                ],
                out_specs=pl.BlockSpec((pl.Squeezed(), TM, Hp),
                                       lambda b, i, k: (b, i, 0)),
                scratch_shapes=[pltpu.VMEM((TM, Hp), jnp.float32)],
            ),
            compiler_params=pltpu.CompilerParams(
                dimension_semantics=("parallel", "parallel", "arbitrary"),
                vmem_limit_bytes=_vmem_limit(est2, cap)),
        )(xp, adjp, z, biasp, g2p, b2p)

    return outp[:, :N, :H]


# --------------------------------------------------------------------------- #
# reference + test
# --------------------------------------------------------------------------- #
def _reference(x, adj, w, bias, g1, b1, g2, b2):
    """Plain-JAX f32 reference for correctness checking."""
    h_dim = x.shape[-1]

    def ln(v, g, b):
        m = jnp.mean(v, axis=-1, keepdims=True)
        s = jnp.sqrt(jnp.sum((v - m) ** 2, axis=-1, keepdims=True) / (h_dim - 1))
        return g * (v - m) / (s + EPS) + b

    y = ln(x, g1, b1)
    h = jnp.maximum(jnp.einsum('bnm,bmh->bnh', adj, y) @ w + bias, 0.0)
    return ln(x + h, g2, b2)


if __name__ == "__main__":
    def run_case(B, N, H, key):
        kx, ka, kw, kb = jax.random.split(key, 4)
        x = jax.random.normal(kx, (B, N, H), dtype=jnp.float32)
        adj = jax.nn.softmax(jax.random.normal(ka, (B, N, N), dtype=jnp.float32),
                             axis=-1)
        w = jax.random.normal(kw, (H, H), dtype=jnp.float32) * (1.0 / jnp.sqrt(H))
        bias = jax.random.normal(kb, (1, H), dtype=jnp.float32) * 0.01
        g1 = jnp.ones((1, H), jnp.float32)
        b1 = jnp.zeros((1, H), jnp.float32)
        g2 = jnp.ones((1, H), jnp.float32)
        b2 = jnp.zeros((1, H), jnp.float32)

        ref = _reference(x, adj, w, bias, g1, b1, g2, b2)
        for force_streamed in (False, True):          # exercise both kernel-2 paths
            out = transformer_block(x, adj, w, bias, g1, b1, g2, b2,
                                    force_streamed=force_streamed)
            out = jax.block_until_ready(out)
            assert out.shape == (B, N, H)
            max_err = float(jnp.max(jnp.abs(out - ref)))
            # bf16 MXU operands + approx EUP reciprocal -> relaxed tolerance.
            assert jnp.allclose(out, ref, atol=5e-2, rtol=5e-2), (
                f"mismatch (B={B},N={N},H={H},streamed={force_streamed}) "
                f"max abs err={max_err}")

    key = jax.random.PRNGKey(0)
    k1, k2 = jax.random.split(key)
    run_case(2, 8, 32, k1)        # module-sized demo shape (masked-LN path)
    run_case(1, 300, 128, k2)     # multi row-tile / multi-k path, H == Hp branch
    print("KERNEL_OK")
</pallas_src>

<mosaic_0001>
module attributes {stable_mosaic.version = 11 : i64} {
  func.func @_ln1_w_kernel(%arg0: i32, %arg1: i32, %arg2: memref<1x128x128xf32, #tpu.memory_space<vmem>>, %arg3: memref<1x128xf32, #tpu.memory_space<vmem>>, %arg4: memref<1x128xf32, #tpu.memory_space<vmem>>, %arg5: memref<128x128xbf16, #tpu.memory_space<vmem>>, %arg6: memref<1x128x128xbf16, #tpu.memory_space<vmem>>) attributes {dimension_semantics = [#tpu.dimension_semantics<parallel>, #tpu.dimension_semantics<parallel>], iteration_bounds = array<i64: 2, 1>, scalar_prefetch = 0 : i64, scratch_operands = 0 : i64, tpu.core_type = #tpu.core_type<tc>, window_params = [{transform_indices = @transform_0, window_bounds = array<i64: 1, 128, 128>}, {pipeline_mode = #tpu.pipeline_mode<synchronous>, transform_indices = @transform_1, window_bounds = array<i64: 1, 128>}, {pipeline_mode = #tpu.pipeline_mode<synchronous>, transform_indices = @transform_2, window_bounds = array<i64: 1, 128>}, {pipeline_mode = #tpu.pipeline_mode<synchronous>, transform_indices = @transform_3, window_bounds = array<i64: 128, 128>}, {transform_indices = @transform_4, window_bounds = array<i64: 1, 128, 128>}]} {
    %c0 = arith.constant 0 : index
    %c0_0 = arith.constant 0 : index
    %c0_1 = arith.constant 0 : index
    %0 = vector.load %arg2[%c0, %c0_0, %c0_1] : memref<1x128x128xf32, #tpu.memory_space<vmem>>, vector<1x128x128xf32>
    %1 = vector.shape_cast %0 : vector<1x128x128xf32> to vector<128x128xf32>
    %c0_2 = arith.constant 0 : index
    %c0_3 = arith.constant 0 : index
    %2 = vector.load %arg3[%c0_2, %c0_3] : memref<1x128xf32, #tpu.memory_space<vmem>>, vector<1x128xf32>
    %c0_4 = arith.constant 0 : index
    %c0_5 = arith.constant 0 : index
    %3 = vector.load %arg4[%c0_4, %c0_5] : memref<1x128xf32, #tpu.memory_space<vmem>>, vector<1x128xf32>
    %cst = arith.constant dense<0.000000e+00> : vector<128xf32>
    %4 = vector.multi_reduction <add>, %1, %cst [1] : vector<128x128xf32> to vector<128xf32>
    %5 = vector.shape_cast %4 : vector<128xf32> to vector<128x1xf32>
    %cst_6 = arith.constant 3.125000e-02 : f32
    %6 = vector.broadcast %cst_6 : f32 to vector<128x1xf32>
    %7 = arith.mulf %5, %6 : vector<128x1xf32>
    %8 = tpu.iota {dimensions = array<i32: 1>} : vector<128x128xi32>
    %c32_i32 = arith.constant 32 : i32
    %9 = vector.broadcast %c32_i32 : i32 to vector<128x128xi32>
    %10 = arith.cmpi slt, %8, %9 : vector<128x128xi32>
    %11 = vector.broadcast %7 : vector<128x1xf32> to vector<128x128xf32>
    %12 = arith.subf %1, %11 : vector<128x128xf32>
    %cst_7 = arith.constant 0.000000e+00 : f32
    %13 = vector.broadcast %cst_7 : f32 to vector<128x128xf32>
    %14 = arith.select %10, %12, %13 : vector<128x128xi1>, vector<128x128xf32>
    %15 = arith.mulf %14, %14 : vector<128x128xf32>
    %cst_8 = arith.constant dense<0.000000e+00> : vector<128xf32>
    %16 = vector.multi_reduction <add>, %15, %cst_8 [1] : vector<128x128xf32> to vector<128xf32>
    %17 = vector.shape_cast %16 : vector<128xf32> to vector<128x1xf32>
    %cst_9 = arith.constant 0.0322580636 : f32
    %18 = vector.broadcast %cst_9 : f32 to vector<128x1xf32>
    %19 = arith.mulf %17, %18 : vector<128x1xf32>
    %20 = math.sqrt %19 : vector<128x1xf32>
    %cst_10 = arith.constant 9.99999997E-7 : f32
    %21 = vector.broadcast %cst_10 : f32 to vector<128x1xf32>
    %22 = arith.addf %20, %21 : vector<128x1xf32>
    %23 = tpu.reciprocal %22 {approx = true} : vector<128x1xf32> -> vector<128x1xf32>
    %24 = vector.broadcast %2 : vector<1x128xf32> to vector<128x128xf32>
    %25 = vector.broadcast %23 : vector<128x1xf32> to vector<128x128xf32>
    %26 = arith.mulf %24, %25 : vector<128x128xf32>
    %27 = arith.mulf %26, %14 : vector<128x128xf32>
    %28 = vector.broadcast %3 : vector<1x128xf32> to vector<128x128xf32>
    %29 = arith.addf %27, %28 : vector<128x128xf32>
    %30 = arith.truncf %29 : vector<128x128xf32> to vector<128x128xbf16>
    %c0_11 = arith.constant 0 : index
    %c0_12 = arith.constant 0 : index
    %31 = vector.load %arg5[%c0_11, %c0_12] : memref<128x128xbf16, #tpu.memory_space<vmem>>, vector<128x128xbf16>
    %cst_13 = arith.constant dense<0.000000e+00> : vector<128x128xf32>
    %32 = tpu.matmul %30, %31, %cst_13 {dimension_numbers = #tpu.dot_dimension_numbers<[1], [0], [0], [1], [0, 0, 1, 1], [], []>} : vector<128x128xbf16>, vector<128x128xbf16>, vector<128x128xf32> -> vector<128x128xf32>
    %33 = arith.truncf %32 : vector<128x128xf32> to vector<128x128xbf16>
    %c0_14 = arith.constant 0 : index
    %c0_15 = arith.constant 0 : index
    %c0_16 = arith.constant 0 : index
    %34 = vector.load %arg6[%c0_14, %c0_15, %c0_16] : memref<1x128x128xbf16, #tpu.memory_space<vmem>>, vector<1x128x128xbf16>
    %35 = vector.shape_cast %34 : vector<1x128x128xbf16> to vector<128x128xbf16>
    %36 = vector.shape_cast %33 : vector<128x128xbf16> to vector<1x128x128xbf16>
    tpu.vector_store %arg6[%c0_14, %c0_15, %c0_16], %36 {strides = array<i32>} : memref<1x128x128xbf16, #tpu.memory_space<vmem>>, vector<1x128x128xbf16>,
    return
  }
  func.func @transform_0(%arg0: i32, %arg1: i32) -> (i32, i32, i32) {
    %c0_i32 = arith.constant 0 : i32
    %c0_i32_0 = arith.constant 0 : i32
    return %arg0, %arg1, %c0_i32 : i32, i32, i32
  }
  func.func @transform_1(%arg0: i32, %arg1: i32) -> (i32, i32) {
    %c0_i32 = arith.constant 0 : i32
    %c0_i32_0 = arith.constant 0 : i32
    %c0_i32_1 = arith.constant 0 : i32
    return %c0_i32, %c0_i32_0 : i32, i32
  }
  func.func @transform_2(%arg0: i32, %arg1: i32) -> (i32, i32) {
    %c0_i32 = arith.constant 0 : i32
    %c0_i32_0 = arith.constant 0 : i32
    %c0_i32_1 = arith.constant 0 : i32
    return %c0_i32, %c0_i32_0 : i32, i32
  }
  func.func @transform_3(%arg0: i32, %arg1: i32) -> (i32, i32) {
    %c0_i32 = arith.constant 0 : i32
    %c0_i32_0 = arith.constant 0 : i32
    %c0_i32_1 = arith.constant 0 : i32
    return %c0_i32, %c0_i32_0 : i32, i32
  }
  func.func @transform_4(%arg0: i32, %arg1: i32) -> (i32, i32, i32) {
    %c0_i32 = arith.constant 0 : i32
    %c0_i32_0 = arith.constant 0 : i32
    return %arg0, %arg1, %c0_i32 : i32, i32, i32
  }
}

module attributes {stable_mosaic.version = 11 : i64} {
  func.func @_gcn_resident_kernel(%arg0: i32, %arg1: i32, %arg2: memref<1x128x128xf32, #tpu.memory_space<vmem>>, %arg3: memref<1x128x128xbf16, #tpu.memory_space<vmem>>, %arg4: memref<1x128x128xbf16, #tpu.memory_space<vmem>>, %arg5: memref<1x128xf32, #tpu.memory_space<vmem>>, %arg6: memref<1x128xf32, #tpu.memory_space<vmem>>, %arg7: memref<1x128xf32, #tpu.memory_space<vmem>>, %arg8: memref<1x128x128xf32, #tpu.memory_space<vmem>>) attributes {dimension_semantics = [#tpu.dimension_semantics<parallel>, #tpu.dimension_semantics<parallel>], iteration_bounds = array<i64: 2, 1>, scalar_prefetch = 0 : i64, scratch_operands = 0 : i64, tpu.core_type = #tpu.core_type<tc>, window_params = [{transform_indices = @transform_0, window_bounds = array<i64: 1, 128, 128>}, {transform_indices = @transform_1, window_bounds = array<i64: 1, 128, 128>}, {transform_indices = @transform_2, window_bounds = array<i64: 1, 128, 128>}, {pipeline_mode = #tpu.pipeline_mode<synchronous>, transform_indices = @transform_3, window_bounds = array<i64: 1, 128>}, {pipeline_mode = #tpu.pipeline_mode<synchronous>, transform_indices = @transform_4, window_bounds = array<i64: 1, 128>}, {pipeline_mode = #tpu.pipeline_mode<synchronous>, transform_indices = @transform_5, window_bounds = array<i64: 1, 128>}, {transform_indices = @transform_6, window_bounds = array<i64: 1, 128, 128>}]} {
    %c0 = arith.constant 0 : index
    %c0_0 = arith.constant 0 : index
    %c0_1 = arith.constant 0 : index
    %0 = vector.load %arg3[%c0, %c0_0, %c0_1] : memref<1x128x128xbf16, #tpu.memory_space<vmem>>, vector<1x128x128xbf16>
    %1 = vector.shape_cast %0 : vector<1x128x128xbf16> to vector<128x128xbf16>
    %c0_2 = arith.constant 0 : index
    %c0_3 = arith.constant 0 : index
    %c0_4 = arith.constant 0 : index
    %2 = vector.load %arg4[%c0_2, %c0_3, %c0_4] : memref<1x128x128xbf16, #tpu.memory_space<vmem>>, vector<1x128x128xbf16>
    %3 = vector.shape_cast %2 : vector<1x128x128xbf16> to vector<128x128xbf16>
    %cst = arith.constant dense<0.000000e+00> : vector<128x128xf32>
    %4 = tpu.matmul %1, %3, %cst {dimension_numbers = #tpu.dot_dimension_numbers<[1], [0], [0], [1], [0, 0, 1, 1], [], []>} : vector<128x128xbf16>, vector<128x128xbf16>, vector<128x128xf32> -> vector<128x128xf32>
    %c0_5 = arith.constant 0 : index
    %c0_6 = arith.constant 0 : index
    %5 = vector.load %arg5[%c0_5, %c0_6] : memref<1x128xf32, #tpu.memory_space<vmem>>, vector<1x128xf32>
    %6 = vector.broadcast %5 : vector<1x128xf32> to vector<128x128xf32>
    %7 = arith.addf %4, %6 : vector<128x128xf32>
    %cst_7 = arith.constant 0.000000e+00 : f32
    %8 = vector.broadcast %cst_7 : f32 to vector<128x128xf32>
    %9 = arith.maximumf %7, %8 : vector<128x128xf32>
    %c0_8 = arith.constant 0 : index
    %c0_9 = arith.constant 0 : index
    %c0_10 = arith.constant 0 : index
    %10 = vector.load %arg2[%c0_8, %c0_9, %c0_10] : memref<1x128x128xf32, #tpu.memory_space<vmem>>, vector<1x128x128xf32>
    %11 = vector.shape_cast %10 : vector<1x128x128xf32> to vector<128x128xf32>
    %12 = arith.addf %11, %9 : vector<128x128xf32>
    %c0_11 = arith.constant 0 : index
    %c0_12 = arith.constant 0 : index
    %13 = vector.load %arg6[%c0_11, %c0_12] : memref<1x128xf32, #tpu.memory_space<vmem>>, vector<1x128xf32>
    %c0_13 = arith.constant 0 : index
    %c0_14 = arith.constant 0 : index
    %14 = vector.load %arg7[%c0_13, %c0_14] : memref<1x128xf32, #tpu.memory_space<vmem>>, vector<1x128xf32>
    %cst_15 = arith.constant dense<0.000000e+00> : vector<128xf32>
    %15 = vector.multi_reduction <add>, %12, %cst_15 [1] : vector<128x128xf32> to vector<128xf32>
    %16 = vector.shape_cast %15 : vector<128xf32> to vector<128x1xf32>
    %cst_16 = arith.constant 3.125000e-02 : f32
    %17 = vector.broadcast %cst_16 : f32 to vector<128x1xf32>
    %18 = arith.mulf %16, %17 : vector<128x1xf32>
    %19 = tpu.iota {dimensions = array<i32: 1>} : vector<128x128xi32>
    %c32_i32 = arith.constant 32 : i32
    %20 = vector.broadcast %c32_i32 : i32 to vector<128x128xi32>
    %21 = arith.cmpi slt, %19, %20 : vector<128x128xi32>
    %22 = vector.broadcast %18 : vector<128x1xf32> to vector<128x128xf32>
    %23 = arith.subf %12, %22 : vector<128x128xf32>
    %cst_17 = arith.constant 0.000000e+00 : f32
    %24 = vector.broadcast %cst_17 : f32 to vector<128x128xf32>
    %25 = arith.select %21, %23, %24 : vector<128x128xi1>, vector<128x128xf32>
    %26 = arith.mulf %25, %25 : vector<128x128xf32>
    %cst_18 = arith.constant dense<0.000000e+00> : vector<128xf32>
    %27 = vector.multi_reduction <add>, %26, %cst_18 [1] : vector<128x128xf32> to vector<128xf32>
    %28 = vector.shape_cast %27 : vector<128xf32> to vector<128x1xf32>
    %cst_19 = arith.constant 0.0322580636 : f32
    %29 = vector.broadcast %cst_19 : f32 to vector<128x1xf32>
    %30 = arith.mulf %28, %29 : vector<128x1xf32>
    %31 = math.sqrt %30 : vector<128x1xf32>
    %cst_20 = arith.constant 9.99999997E-7 : f32
    %32 = vector.broadcast %cst_20 : f32 to vector<128x1xf32>
    %33 = arith.addf %31, %32 : vector<128x1xf32>
    %34 = tpu.reciprocal %33 {approx = true} : vector<128x1xf32> -> vector<128x1xf32>
    %35 = vector.broadcast %13 : vector<1x128xf32> to vector<128x128xf32>
    %36 = vector.broadcast %34 : vector<128x1xf32> to vector<128x128xf32>
    %37 = arith.mulf %35, %36 : vector<128x128xf32>
    %38 = arith.mulf %37, %25 : vector<128x128xf32>
    %39 = vector.broadcast %14 : vector<1x128xf32> to vector<128x128xf32>
    %40 = arith.addf %38, %39 : vector<128x128xf32>
    %c0_21 = arith.constant 0 : index
    %c0_22 = arith.constant 0 : index
    %c0_23 = arith.constant 0 : index
    %41 = vector.load %arg8[%c0_21, %c0_22, %c0_23] : memref<1x128x128xf32, #tpu.memory_space<vmem>>, vector<1x128x128xf32>
    %42 = vector.shape_cast %41 : vector<1x128x128xf32> to vector<128x128xf32>
    %43 = vector.shape_cast %40 : vector<128x128xf32> to vector<1x128x128xf32>
    tpu.vector_store %arg8[%c0_21, %c0_22, %c0_23], %43 {strides = array<i32>} : memref<1x128x128xf32, #tpu.memory_space<vmem>>, vector<1x128x128xf32>,
    return
  }
  func.func @transform_0(%arg0: i32, %arg1: i32) -> (i32, i32, i32) {
    %c0_i32 = arith.constant 0 : i32
    %c0_i32_0 = arith.constant 0 : i32
    return %arg0, %arg1, %c0_i32 : i32, i32, i32
  }
  func.func @transform_1(%arg0: i32, %arg1: i32) -> (i32, i32, i32) {
    %c0_i32 = arith.constant 0 : i32
    %c0_i32_0 = arith.constant 0 : i32
    return %arg0, %arg1, %c0_i32 : i32, i32, i32
  }
  func.func @transform_2(%arg0: i32, %arg1: i32) -> (i32, i32, i32) {
    %c0_i32 = arith.constant 0 : i32
    %c0_i32_0 = arith.constant 0 : i32
    %c0_i32_1 = arith.constant 0 : i32
    return %arg0, %c0_i32, %c0_i32_0 : i32, i32, i32
  }
  func.func @transform_3(%arg0: i32, %arg1: i32) -> (i32, i32) {
    %c0_i32 = arith.constant 0 : i32
    %c0_i32_0 = arith.constant 0 : i32
    %c0_i32_1 = arith.constant 0 : i32
    return %c0_i32, %c0_i32_0 : i32, i32
  }
  func.func @transform_4(%arg0: i32, %arg1: i32) -> (i32, i32) {
    %c0_i32 = arith.constant 0 : i32
    %c0_i32_0 = arith.constant 0 : i32
    %c0_i32_1 = arith.constant 0 : i32
    return %c0_i32, %c0_i32_0 : i32, i32
  }
  func.func @transform_5(%arg0: i32, %arg1: i32) -> (i32, i32) {
    %c0_i32 = arith.constant 0 : i32
    %c0_i32_0 = arith.constant 0 : i32
    %c0_i32_1 = arith.constant 0 : i32
    return %c0_i32, %c0_i32_0 : i32, i32
  }
  func.func @transform_6(%arg0: i32, %arg1: i32) -> (i32, i32, i32) {
    %c0_i32 = arith.constant 0 : i32
    %c0_i32_0 = arith.constant 0 : i32
    return %arg0, %arg1, %c0_i32 : i32, i32, i32
  }
}

</mosaic_0001>

<bundles_post_ra>
// kernel: transformer_block.2
= control target key start
LH: loop header
LB: loop body
LE: loop exit
PB: predicated region body
PF: predicated region fallthrough
CT: control target
= control target key end

     0   :  { %s1254_s15 = smov 0   ;;  %s1256_s16 = smov 0   ;;  %s1690_s0 = inlined_call_operand.vmem [shape: f32[2,128,128], index: 0, kind: input, shape index: {}]   ;;  %s1691_s1 = inlined_call_operand.vmem [shape: f32[1,128], index: 1, kind: input, shape index: {}]   ;;  %s1692_s2 = inlined_call_operand.vmem [shape: f32[1,128], index: 2, kind: input, shape index: {}]   ;;  %s1693_s3 = inlined_call_operand.vmem [shape: bf16[128,128], index: 3, kind: input, shape index: {}]   ;;  %s1694_s4 = inlined_call_operand.vmem [shape: bf16[2,128,128], index: 4, kind: output, shape index: {}]  }
   0x1   :  { %s1258_s17 = smov 0  }
   0x2 LB: > { %s26_s18 = sadd.s32 1, %s1223_s16  ;;  %p947_p0 = scmp.ge.s32.totalorder %s1227_s17, 1  ;;  %s1227_s17 = sphi %s1258_s17, %s14_s17   ;;  %s1223_s16 = sphi %s1256_s16, %s1696_s16   ;;  %s1219_s15 = sphi %s1254_s15, %s1695_s15  }
   0x3   : > { %p28_p1 = scmp.ge.s32.totalorder %s26_s18, 2  ;;  %p183_p2 = scmp.lt.s32.totalorder %s1227_s17, 3 }
   0x5   : > { %s1698_s18 = smov (%p28_p1, %s26_s18), 0  ;;  %p184_p3 = pnand %p947_p0, %p183_p2 }
   0x6   : > { %p218_p4 = scmp.lt.s32.totalorder (!%p184_p3), %s1219_s15, 1  ;;  %v304_v16 = vlaneseq (!%p184_p3) }
   0x7   : > { %187 = sbr.rel (%p184_p3) target bundleno = 598 (0x256), region = 36 }
   0x8   : > { %v1308_v17 = vand.u32 (!%p184_p3), 127, %v304_v16 }
   0xa   : > { %vm306_vm0 = vcmp.lt.s32.totalorder (!%p184_p3), %v1308_v17, 32  ;;  %v1134_v17 = vld [vmem:[%s1693_s3 + $0x8] sm:$0xff] (!%p184_p3)  }
   0xe   : > { %s1700_s15 = smov (!%p218_p4, %s1219_s15), 1 }
   0xf   : > { %s980_s19 = sshll.u32 %s1700_s15, 7  ;;  %s981_s21 = sshll.u32 %s1700_s15, 6 }
  0x10   : > { %s225_s22 = scalar_lea.vmem %s1690_s0, %s980_s19  ;;  %s235_s24 = scalar_lea.vmem %s1694_s4, %s981_s21 }
  0x11   : > { %v238_v0 = vld [vmem:[%s225_s22] sm:$0xff]  ;;  %v239_v2 = vld [vmem:[%s225_s22 + $0x8] sm:$0xff]  ;;  %v240_v4 = vld [vmem:[%s225_s22 + $0x10] sm:$0xff] }
  0x12   : > { %v246_v1 = vld [vmem:[%s225_s22 + $0x40] sm:$0xff]  ;;  %256 = vadd.xlane.f32.xlu0 %v238_v0  ;;  %v247_v3 = vld [vmem:[%s225_s22 + $0x48] sm:$0xff]  ;;  %v241_v5 = vld [vmem:[%s225_s22 + $0x18] sm:$0xff] }
  0x13   : > { %272 = vadd.xlane.f32.xlu1 %v246_v1  ;;  %v1278_v6 = vld [vmem:[%s225_s22 + $0x50] sm:$0xff]  ;;  %v1280_v7 = vld [vmem:[%s225_s22 + $0x58] sm:$0xff]  ;;  %v1284_v8 = vld [vmem:[%s225_s22 + $0x20] sm:$0xff] }
  0x14   : > { %v1286_v9 = vld [vmem:[%s225_s22 + $0x28] sm:$0xff]  ;;  %v1290_v10 = vld [vmem:[%s225_s22 + $0x60] sm:$0xff]  ;;  %v1296_v12 = vld [vmem:[%s225_s22 + $0x30] sm:$0xff] }
  0x15   : > { %v1292_v11 = vld [vmem:[%s225_s22 + $0x68] sm:$0xff]  ;;  %v1298_v13 = vld [vmem:[%s225_s22 + $0x38] sm:$0xff]  ;;  %v1302_v14 = vld [vmem:[%s225_s22 + $0x70] sm:$0xff] }
  0x16   : > { %258 = vadd.xlane.f32.xlu0 %v239_v2  ;;  %v1304_v15 = vld [vmem:[%s225_s22 + $0x78] sm:$0xff] }
  0x17   : > { %274 = vadd.xlane.f32.xlu1 %v247_v3 }
  0x1a   : > { %260 = vadd.xlane.f32.xlu0 %v240_v4 }
  0x1b   : > { %262 = vadd.xlane.f32.xlu1 %v241_v5 }
  0x1e   : > { %276 = vadd.xlane.f32.xlu0 %v1278_v6 }
  0x1f   : > { %278 = vadd.xlane.f32.xlu1 %v1280_v7 }
  0x22   : > { %264 = vadd.xlane.f32.xlu0 %v1284_v8 }
  0x23   : > { %266 = vadd.xlane.f32.xlu1 %v1286_v9 }
  0x26   : > { %280 = vadd.xlane.f32.xlu0 %v1290_v10 }
  0x27   : > { %282 = vadd.xlane.f32.xlu1 %v1292_v11 }
  0x2a   : > { %268 = vadd.xlane.f32.xlu0 %v1296_v12 }
  0x2b   : > { %270 = vadd.xlane.f32.xlu1 %v1298_v13 }
  0x2e   : > { %284 = vadd.xlane.f32.xlu0 %v1302_v14 }
  0x2f   : > { %286 = vadd.xlane.f32.xlu1 %v1304_v15 }
  0x9f   : > { %v257_v18 = vpop.xlane.xlu0 %256 }
  0xa0   : > { %v273_v19 = vpop.xlane.xlu1 %272  ;;  %v288_v20 = vmul.f32 0.03125, %v257_v18 }
  0xa1   : > { %v296_v21 = vmul.f32 0.03125, %v273_v19 }
  0xa2   : > { %v307_v22 = vsub.f32 %v238_v0, %v288_v20 }
  0xa3   : > { %v315_v23 = vsub.f32 %v246_v1, %v296_v21  ;;  %v259_v24 = vpop.xlane.xlu0 %258 }
  0xa4   : > { %v275_v25 = vpop.xlane.xlu1 %274  ;;  %v289_v26 = vmul.f32 0.03125, %v259_v24  ;;  %v1313_v28 = vsel %vm306_vm0, %v307_v22, 0.0 }
  0xa5   : > { %v297_v27 = vmul.f32 0.03125, %v275_v25  ;;  %v1317_v29 = vsel %vm306_vm0, %v315_v23, 0.0  ;;  %v339_v30 = vmul.f32 %v1313_v28, %v1313_v28 }
  0xa6   : > { %v308_v31 = vsub.f32 %v239_v2, %v289_v26  ;;  %v347_v35 = vmul.f32 %v1317_v29, %v1317_v29 }
  0xa7   : > { %v316_v32 = vsub.f32 %v247_v3, %v297_v27  ;;  %355 = vadd.xlane.f32.xlu0 %v339_v30  ;;  %v261_v33 = vpop.xlane.xlu0 %260 }
  0xa8   : > { %v263_v34 = vpop.xlane.xlu1 %262  ;;  %v290_v36 = vmul.f32 0.03125, %v261_v33  ;;  %v1325_v38 = vsel %vm306_vm0, %v308_v31, 0.0 }
  0xa9   : > { %v291_v37 = vmul.f32 0.03125, %v263_v34  ;;  %v1329_v39 = vsel %vm306_vm0, %v316_v32, 0.0  ;;  %v340_v40 = vmul.f32 %v1325_v38, %v1325_v38 }
  0xaa   : > { %v309_v41 = vsub.f32 %v240_v4, %v290_v36  ;;  %v348_v45 = vmul.f32 %v1329_v39, %v1329_v39 }
  0xab   : > { %v310_v42 = vsub.f32 %v241_v5, %v291_v37  ;;  %371 = vadd.xlane.f32.xlu0 %v347_v35  ;;  %357 = vadd.xlane.f32.xlu1 %v340_v40  ;;  %v277_v43 = vpop.xlane.xlu0 %276  ;;  %v1135_v40 = vld [vmem:[%s1693_s3 + $0x10] sm:$0xff]  }
  0xac   : > { %v279_v44 = vpop.xlane.xlu1 %278  ;;  %v298_v46 = vmul.f32 0.03125, %v277_v43  ;;  %v1337_v48 = vsel %vm306_vm0, %v309_v41, 0.0  ;;  %v1136_v41 = vld [vmem:[%s1693_s3 + $0x18] sm:$0xff]   ;;  %v1138_v43 = vld [vmem:[%s1693_s3 + $0x28] sm:$0xff]  }
  0xad   : > { %v299_v47 = vmul.f32 0.03125, %v279_v44  ;;  %v1341_v49 = vsel %vm306_vm0, %v310_v42, 0.0  ;;  %v341_v50 = vmul.f32 %v1337_v48, %v1337_v48  ;;  %v1137_v42 = vld [vmem:[%s1693_s3 + $0x20] sm:$0xff]   ;;  %v1139_v44 = vld [vmem:[%s1693_s3 + $0x30] sm:$0xff]  }
  0xae   : > { %v317_v51 = vsub.f32 %v1278_v6, %v298_v46  ;;  %v342_v55 = vmul.f32 %v1341_v49, %v1341_v49 }
  0xaf   : > { %v318_v52 = vsub.f32 %v1280_v7, %v299_v47  ;;  %373 = vadd.xlane.f32.xlu1 %v348_v45  ;;  %359 = vadd.xlane.f32.xlu0 %v341_v50  ;;  %v265_v53 = vpop.xlane.xlu0 %264  ;;  %v1140_v45 = vld [vmem:[%s1693_s3 + $0x38] sm:$0xff]  }
  0xb0   : > { %v267_v54 = vpop.xlane.xlu1 %266  ;;  %v292_v56 = vmul.f32 0.03125, %v265_v53  ;;  %v1351_v58 = vsel %vm306_vm0, %v317_v51, 0.0 }
  0xb1   : > { %v293_v57 = vmul.f32 0.03125, %v267_v54  ;;  %v1355_v59 = vsel %vm306_vm0, %v318_v52, 0.0  ;;  %v349_v60 = vmul.f32 %v1351_v58, %v1351_v58 }
  0xb2   : > { %v311_v61 = vsub.f32 %v1284_v8, %v292_v56  ;;  %v350_v1 = vmul.f32 %v1355_v59, %v1355_v59 }
  0xb3   : > { %v312_v62 = vsub.f32 %v1286_v9, %v293_v57  ;;  %361 = vadd.xlane.f32.xlu1 %v342_v55  ;;  %375 = vadd.xlane.f32.xlu0 %v349_v60  ;;  %v281_v63 = vpop.xlane.xlu0 %280 }
  0xb4   : > { %v283_v0 = vpop.xlane.xlu1 %282  ;;  %v300_v2 = vmul.f32 0.03125, %v281_v63  ;;  %v1365_v4 = vsel %vm306_vm0, %v311_v61, 0.0 }
  0xb5   : > { %v301_v3 = vmul.f32 0.03125, %v283_v0  ;;  %v1369_v5 = vsel %vm306_vm0, %v312_v62, 0.0  ;;  %v343_v6 = vmul.f32 %v1365_v4, %v1365_v4 }
  0xb6   : > { %v319_v7 = vsub.f32 %v1290_v10, %v300_v2  ;;  %v344_v18 = vmul.f32 %v1369_v5, %v1369_v5 }
  0xb7   : > { %v320_v8 = vsub.f32 %v1292_v11, %v301_v3  ;;  %377 = vadd.xlane.f32.xlu1 %v350_v1  ;;  %363 = vadd.xlane.f32.xlu0 %v343_v6  ;;  %v269_v9 = vpop.xlane.xlu0 %268 }
  0xb8   : > { %v271_v16 = vpop.xlane.xlu1 %270  ;;  %v294_v19 = vmul.f32 0.03125, %v269_v9  ;;  %v1379_v21 = vsel %vm306_vm0, %v319_v7, 0.0 }
  0xb9   : > { %v295_v20 = vmul.f32 0.03125, %v271_v16  ;;  %v1383_v22 = vsel %vm306_vm0, %v320_v8, 0.0  ;;  %v351_v10 = vmul.f32 %v1379_v21, %v1379_v21 }
  0xba   : > { %v313_v11 = vsub.f32 %v1296_v12, %v294_v19  ;;  %v352_v26 = vmul.f32 %v1383_v22, %v1383_v22 }
  0xbb   : > { %v314_v23 = vsub.f32 %v1298_v13, %v295_v20  ;;  %365 = vadd.xlane.f32.xlu1 %v344_v18  ;;  %379 = vadd.xlane.f32.xlu0 %v351_v10  ;;  %v285_v24 = vpop.xlane.xlu0 %284 }
  0xbc   : > { %v287_v25 = vpop.xlane.xlu1 %286  ;;  %v302_v27 = vmul.f32 0.03125, %v285_v24  ;;  %v1393_v31 = vsel %vm306_vm0, %v313_v11, 0.0 }
  0xbd   : > { %v303_v30 = vmul.f32 0.03125, %v287_v25  ;;  %v1397_v32 = vsel %vm306_vm0, %v314_v23, 0.0  ;;  %v345_v12 = vmul.f32 %v1393_v31, %v1393_v31 }
  0xbe   : > { %v321_v13 = vsub.f32 %v1302_v14, %v302_v27  ;;  %v346_v34 = vmul.f32 %v1397_v32, %v1397_v32 }
  0xbf   : > { %v322_v33 = vsub.f32 %v1304_v15, %v303_v30  ;;  %381 = vadd.xlane.f32.xlu1 %v352_v26  ;;  %367 = vadd.xlane.f32.xlu0 %v345_v12  ;;  %v1133_v15 = vld [vmem:[%s1693_s3] sm:$0xff]  }
  0xc0   : > { %v1407_v35 = vsel %vm306_vm0, %v321_v13, 0.0  ;;  %1061 = vmatprep.subr.bf16.mxu0 %v1133_v15  ;;  %1093 = vmatprep.subr.bf16.mxu1 %v1133_v15 }
  0xc1   : > { %v1411_v36 = vsel %vm306_vm0, %v322_v33, 0.0  ;;  %v353_v37 = vmul.f32 %v1407_v35, %v1407_v35  ;;  %1062 = vmatpush3.bf16.msra.mxu0 %v1133_v15  ;;  %1101 = vmatpush3.bf16.msra.mxu1 %v1133_v15 }
  0xc2   : > { %v354_v14 = vmul.f32 %v1411_v36, %v1411_v36  ;;  %1063 = vmatprep.subr.bf16.mxu0 %v1134_v17  ;;  %1094 = vmatprep.subr.bf16.mxu1 %v1134_v17 }
  0xc3   : > { %369 = vadd.xlane.f32.xlu1 %v346_v34  ;;  %383 = vadd.xlane.f32.xlu0 %v353_v37 }
  0xc5   : > { %1064 = vmatpush3.bf16.msra.mxu0 %v1134_v17  ;;  %1102 = vmatpush3.bf16.msra.mxu1 %v1134_v17 }
  0xc6   : > { %1065 = vmatprep.subr.bf16.mxu0 %v1135_v40  ;;  %1095 = vmatprep.subr.bf16.mxu1 %v1135_v40 }
  0xc7   : > { %385 = vadd.xlane.f32.xlu1 %v354_v14 }
  0xc9   : > { %1066 = vmatpush3.bf16.msra.mxu0 %v1135_v40  ;;  %1103 = vmatpush3.bf16.msra.mxu1 %v1135_v40 }
  0xca   : > { %1067 = vmatprep.subr.bf16.mxu0 %v1136_v41  ;;  %1096 = vmatprep.subr.bf16.mxu1 %v1136_v41 }
  0xcd   : > { %1068 = vmatpush3.bf16.msra.mxu0 %v1136_v41  ;;  %1104 = vmatpush3.bf16.msra.mxu1 %v1136_v41 }
  0xce   : > { %1069 = vmatprep.subr.bf16.mxu0 %v1137_v42  ;;  %1097 = vmatprep.subr.bf16.mxu1 %v1137_v42 }
  0xd1   : > { %1070 = vmatpush3.bf16.msra.mxu0 %v1137_v42  ;;  %1105 = vmatpush3.bf16.msra.mxu1 %v1137_v42 }
  0xd2   : > { %1071 = vmatprep.subr.bf16.mxu0 %v1138_v43  ;;  %1098 = vmatprep.subr.bf16.mxu1 %v1138_v43 }
  0xd5   : > { %1072 = vmatpush3.bf16.msra.mxu0 %v1138_v43  ;;  %1106 = vmatpush3.bf16.msra.mxu1 %v1138_v43 }
  0xd6   : > { %1073 = vmatprep.subr.bf16.mxu0 %v1139_v44  ;;  %1099 = vmatprep.subr.bf16.mxu1 %v1139_v44 }
  0xd9   : > { %1074 = vmatpush3.bf16.msra.mxu0 %v1139_v44  ;;  %1107 = vmatpush3.bf16.msra.mxu1 %v1139_v44 }
  0xda   : > { %1075 = vmatprep.subr.bf16.mxu0 %v1140_v45  ;;  %1100 = vmatprep.subr.bf16.mxu1 %v1140_v45 }
  0xdd   : > { %1076 = vmatpush3.bf16.msra.mxu0 %v1140_v45  ;;  %1108 = vmatpush3.bf16.msra.mxu1 %v1140_v45 }
 0x134   : > { %v356_v46 = vpop.xlane.xlu0 %355 }
 0x135   : > { %v387_v47 = vmul.f32 0.032258064, %v356_v46 }
 0x137   : > { %1141 = vrsqrt.f32 %v387_v47  ;;  %vm405_vm1 = vcmp.eq.f32.partialorder %v387_v47, inf  ;;  %v408_v3 = vand.u32 2147483648, %v387_v47  ;;  %vm407_vm2 = vcmp.eq.f32.partialorder %v387_v47, 0.0 }
 0x138   : > { %v358_v50 = vpop.xlane.xlu1 %357  ;;  %v372_v51 = vpop.xlane.xlu0 %371 }
 0x139   : > { %v1441_v52 = vmul.f32 0.032258064, %v358_v50  ;;  %v1443_v53 = vmul.f32 0.032258064, %v372_v51 }
 0x13b   : > { %1143 = vrsqrt.f32 %v1441_v52  ;;  %vm412_vm3 = vcmp.eq.f32.partialorder %v1441_v52, inf  ;;  %vm414_vm4 = vcmp.eq.f32.partialorder %v1441_v52, 0.0  ;;  %v415_v20 = vand.u32 2147483648, %v1441_v52 }
 0x13c   : > { %v374_v54 = vpop.xlane.xlu1 %373  ;;  %v360_v55 = vpop.xlane.xlu0 %359  ;;  %1145 = vrsqrt.f32 %v1443_v53  ;;  %vm461_vm5 = vcmp.eq.f32.partialorder %v1443_v53, inf  ;;  %v464_v11 = vand.u32 2147483648, %v1443_v53  ;;  %vm463_vm13 = vcmp.eq.f32.partialorder %v1443_v53, 0.0 }
 0x13d   : > { %v1446_v56 = vmul.f32 0.032258064, %v374_v54  ;;  %v1448_v57 = vmul.f32 0.032258064, %v360_v55 }
 0x13f   : > { %1147 = vrsqrt.f32 %v1446_v56  ;;  %vm468_vm6 = vcmp.eq.f32.partialorder %v1446_v56, inf  ;;  %v471_v23 = vand.u32 2147483648, %v1446_v56  ;;  %vm419_vm7 = vcmp.eq.f32.partialorder %v1448_v57, inf }
 0x140   : > { %1149 = vrsqrt.f32 %v1448_v57  ;;  %v362_v60 = vpop.xlane.xlu1 %361  ;;  %v376_v61 = vpop.xlane.xlu0 %375  ;;  %vm421_vm8 = vcmp.eq.f32.partialorder %v1448_v57, 0.0  ;;  %v422_v33 = vand.u32 2147483648, %v1448_v57 }
 0x141   : > { %v1142_v62 = vpop.eup %1141  ;;  %v1453_v63 = vmul.f32 0.032258064, %v362_v60  ;;  %v1455_v0 = vmul.f32 0.032258064, %v376_v61 }
 0x142   : > { %v404_v1 = vmul.f32 %v1142_v62, %v387_v47 }
 0x143   : > { %1151 = vrsqrt.f32 %v1453_v63  ;;  %vm426_vm9 = vcmp.eq.f32.partialorder %v1453_v63, inf  ;;  %v429_v14 = vand.u32 2147483648, %v1453_v63  ;;  %vm475_vm10 = vcmp.eq.f32.partialorder %v1455_v0, inf }
 0x144   : > { %v406_v2 = vsel %vm405_vm1, %v387_v47, %v404_v1  ;;  %1153 = vrsqrt.f32 %v1455_v0  ;;  %v378_v6 = vpop.xlane.xlu1 %377  ;;  %v364_v7 = vpop.xlane.xlu0 %363  ;;  %vm428_vm11 = vcmp.eq.f32.partialorder %v1453_v63, 0.0  ;;  %vm477_vm12 = vcmp.eq.f32.partialorder %v1455_v0, 0.0 }
 0x145   : > { %v1144_v8 = vpop.eup %1143  ;;  %v1459_v9 = vmul.f32 0.032258064, %v378_v6  ;;  %v1461_v16 = vmul.f32 0.032258064, %v364_v7  ;;  %v409_v19 = vsel %vm407_vm2, %v408_v3, %v406_v2  ;;  %v478_v17 = vand.u32 2147483648, %v1455_v0 }
 0x146   : > { %v411_v18 = vmul.f32 %v1144_v8, %v1441_v52  ;;  %v1146_v10 = vpop.eup %1145  ;;  %v515_v30 = vadd.f32 1e-06, %v409_v19  ;;  %vm470_vm1 = vcmp.eq.f32.partialorder %v1446_v56, 0.0 }
 0x147   : > { %1155 = vrsqrt.f32 %v1459_v9  ;;  %v460_v15 = vmul.f32 %v1146_v10, %v1443_v53  ;;  %vm482_vm14 = vcmp.eq.f32.partialorder %v1459_v9, inf  ;;  %vm484_vm15 = vcmp.eq.f32.partialorder %v1459_v9, 0.0 }
 0x148   : > { %1157 = vrsqrt.f32 %v1461_v16  ;;  %v366_v24 = vpop.xlane.xlu1 %365  ;;  %v380_v25 = vpop.xlane.xlu0 %379  ;;  %v413_v13 = vsel %vm412_vm3, %v1441_v52, %v411_v18  ;;  %v485_v52 = vand.u32 2147483648, %v1459_v9  ;;  %vm433_vm0 = vcmp.eq.f32.partialorder %v1461_v16, inf }
 0x149   : > { %v1148_v26 = vpop.eup %1147  ;;  %v1475_v27 = vmul.f32 0.032258064, %v366_v24  ;;  %v1482_v34 = vmul.f32 0.032258064, %v380_v25  ;;  %v416_v45 = vsel %vm414_vm4, %v415_v20, %v413_v13  ;;  %v462_v55 = vsel %vm461_vm5, %v1443_v53, %v460_v15 }
 0x14a   : > { %v1150_v12 = vpop.eup %1149  ;;  %v467_v43 = vmul.f32 %v1148_v26, %v1446_v56  ;;  %vm435_vm2 = vcmp.eq.f32.partialorder %v1461_v16, 0.0  ;;  %v516_v62 = vadd.f32 1e-06, %v416_v45  ;;  %v436_v6 = vand.u32 2147483648, %v1461_v16 }
 0x14b   : > { %v418_v37 = vmul.f32 %v1150_v12, %v1448_v57  ;;  %1159 = vrsqrt.f32 %v1475_v27  ;;  %vm440_vm3 = vcmp.eq.f32.partialorder %v1475_v27, inf  ;;  %v443_v20 = vand.u32 2147483648, %v1475_v27 }
 0x14c   : > { %1161 = vrsqrt.f32 %v1482_v34  ;;  %v382_v40 = vpop.xlane.xlu1 %381  ;;  %v368_v41 = vpop.xlane.xlu0 %367  ;;  %v469_v2 = vsel %vm468_vm6, %v1446_v56, %v467_v43  ;;  %vm489_vm4 = vcmp.eq.f32.partialorder %v1482_v34, inf  ;;  %vm442_vm5 = vcmp.eq.f32.partialorder %v1475_v27, 0.0 }
 0x14d   : > { %v1152_v42 = vpop.eup %1151  ;;  %v1494_v44 = vmul.f32 0.032258064, %v382_v40  ;;  %1163 = vrcp.f32 %v515_v30  ;;  %v420_v47 = vsel %vm419_vm7, %v1448_v57, %v418_v37  ;;  %v1504_v51 = vmul.f32 0.032258064, %v368_v41  ;;  %v1563_v41 = vld [vmem:[%s1691_s1] ss:$0 sm:$0xff] }
 0x14e   : > { %v1154_v46 = vpop.eup %1153  ;;  %v425_v50 = vmul.f32 %v1152_v42, %v1453_v63  ;;  %v423_v3 = vsel %vm421_vm8, %v422_v33, %v420_v47  ;;  %v492_v26 = vand.u32 2147483648, %v1482_v34  ;;  %vm491_vm7 = vcmp.eq.f32.partialorder %v1482_v34, 0.0 }
 0x14f   : > { %v474_v54 = vmul.f32 %v1154_v46, %v1455_v0  ;;  %1165 = vrsqrt.f32 %v1494_v44  ;;  %v517_v25 = vadd.f32 1e-06, %v423_v3  ;;  %vm496_vm6 = vcmp.eq.f32.partialorder %v1494_v44, inf }
 0x150   : > { %1167 = vrsqrt.f32 %v1504_v51  ;;  %v370_v60 = vpop.xlane.xlu1 %369  ;;  %v384_v61 = vpop.xlane.xlu0 %383  ;;  %v427_v8 = vsel %vm426_vm9, %v1453_v63, %v425_v50  ;;  %vm498_vm8 = vcmp.eq.f32.partialorder %v1494_v44, 0.0  ;;  %vm447_vm9 = vcmp.eq.f32.partialorder %v1504_v51, inf }
 0x151   : > { %v1156_v1 = vpop.eup %1155  ;;  %v476_v18 = vsel %vm475_vm10, %v1455_v0, %v474_v54  ;;  %v1534_v10 = vmul.f32 0.032258064, %v370_v60  ;;  %v1536_v24 = vmul.f32 0.032258064, %v384_v61  ;;  %1169 = vrcp.f32 %v516_v62 }
 0x152   : > { %v1158_v7 = vpop.eup %1157  ;;  %v481_v19 = vmul.f32 %v1156_v1, %v1459_v9  ;;  %v430_v12 = vsel %vm428_vm11, %v429_v14, %v427_v8  ;;  %v479_v13 = vsel %vm477_vm12, %v478_v17, %v476_v18  ;;  %v499_v0 = vand.u32 2147483648, %v1494_v44 }
 0x153   : > { %v432_v57 = vmul.f32 %v1158_v7, %v1461_v16  ;;  %1171 = vrsqrt.f32 %v1534_v10  ;;  %vm449_vm10 = vcmp.eq.f32.partialorder %v1504_v51, 0.0  ;;  %v465_v42 = vsel %vm463_vm13, %v464_v11, %v462_v55 }
 0x154   : > { %v483_v33 = vsel %vm482_vm14, %v1459_v9, %v481_v19  ;;  %v386_v14 = vpop.xlane.xlu1 %385  ;;  %1173 = vrsqrt.f32 %v1536_v24  ;;  %v518_v43 = vadd.f32 1e-06, %v430_v12  ;;  %v525_v45 = vadd.f32 1e-06, %v479_v13 }
 0x155   : > { %v1160_v30 = vpop.eup %1159  ;;  %v434_v15 = vsel %vm433_vm0, %v1461_v16, %v432_v57  ;;  %v486_v46 = vsel %vm484_vm15, %v485_v52, %v483_v33  ;;  %v450_v47 = vand.u32 2147483648, %v1504_v51  ;;  %vm454_vm11 = vcmp.eq.f32.partialorder %v1534_v10, inf }
 0x156   : > { %v1162_v37 = vpop.eup %1161  ;;  %v439_v63 = vmul.f32 %v1160_v30, %v1475_v27  ;;  %v437_v54 = vsel %vm435_vm2, %v436_v6, %v434_v15  ;;  %v1575_v60 = vmul.f32 0.032258064, %v386_v14  ;;  %v472_v53 = vsel %vm470_vm1, %v471_v23, %v469_v2 }
 0x157   : > { %v1164_v17 = vpop.eup %1163  ;;  %v488_v40 = vmul.f32 %v1162_v37, %v1482_v34  ;;  %v523_v16 = vadd.f32 1e-06, %v465_v42  ;;  %v526_v61 = vadd.f32 1e-06, %v486_v46  ;;  %v519_v56 = vadd.f32 1e-06, %v437_v54 }
 0x158   : > { %v441_v9 = vsel %vm440_vm3, %v1475_v27, %v439_v63  ;;  %v553_v55 = vmul.f32 %v1164_v17, %v1563_v41  ;;  %1175 = vrsqrt.f32 %v1575_v60  ;;  %vm456_vm12 = vcmp.eq.f32.partialorder %v1534_v10, 0.0 }
 0x159   : > { %v1166_v50 = vpop.eup %1165  ;;  %v490_v62 = vsel %vm489_vm4, %v1482_v34, %v488_v40  ;;  %v457_v2 = vand.u32 2147483648, %v1534_v10  ;;  %v444_v3 = vsel %vm442_vm5, %v443_v20, %v441_v9  ;;  %v524_v7 = vadd.f32 1e-06, %v472_v53  ;;  %v1611_v20 = vld [vmem:[%s1692_s2] ss:$0 sm:$0xff] }
 0x15a   : > { %v1168_v11 = vpop.eup %1167  ;;  %v495_v52 = vmul.f32 %v1166_v50, %v1494_v44  ;;  %1177 = vrcp.f32 %v523_v16  ;;  %v493_v18 = vsel %vm491_vm7, %v492_v26, %v490_v62  ;;  %v569_v57 = vmul.f32 %v553_v55, %v1313_v28 }
 0x15b   : > { %v446_v1 = vmul.f32 %v1168_v11, %v1504_v51  ;;  %v1170_v8 = vpop.eup %1169  ;;  %1179 = vrcp.f32 %v517_v25  ;;  %vm503_vm13 = vcmp.eq.f32.partialorder %v1536_v24, inf  ;;  %v506_v27 = vand.u32 2147483648, %v1536_v24 }
 0x15c   : > { %v497_v23 = vsel %vm496_vm6, %v1494_v44, %v495_v52  ;;  %v554_v12 = vmul.f32 %v1170_v8, %v1563_v41  ;;  %1181 = vrcp.f32 %v524_v7  ;;  %v520_v34 = vadd.f32 1e-06, %v444_v3 }
 0x15d   : > { %v448_v6 = vsel %vm447_vm9, %v1504_v51, %v446_v1  ;;  %v500_v19 = vsel %vm498_vm8, %v499_v0, %v497_v23  ;;  %v1172_v30 = vpop.eup %1171  ;;  %1183 = vrcp.f32 %v518_v43  ;;  %v527_v26 = vadd.f32 1e-06, %v493_v18 }
 0x15e   : > { %v451_v44 = vsel %vm449_vm10, %v450_v47, %v448_v6  ;;  %v453_v28 = vmul.f32 %v1172_v30, %v1534_v10  ;;  %v1174_v25 = vpop.eup %1173  ;;  %v528_v13 = vadd.f32 1e-06, %v500_v19  ;;  %v570_v33 = vmul.f32 %v554_v12, %v1325_v38 }
 0x15f   : > { %1185 = vrcp.f32 %v525_v45  ;;  %v502_v15 = vmul.f32 %v1174_v25, %v1536_v24  ;;  %v591_v63 = vadd.f32 %v1611_v20, %v569_v57  ;;  %v521_v51 = vadd.f32 1e-06, %v451_v44 }
 0x160   : > { %v455_v37 = vsel %vm454_vm11, %v1534_v10, %v453_v28  ;;  %1187 = vrcp.f32 %v526_v61  ;;  %v592_v14 = vadd.f32 %v1611_v20, %v570_v33  ;;  %vm505_vm14 = vcmp.eq.f32.partialorder %v1536_v24, 0.0 }
 0x161   : > { %v458_v0 = vsel %vm456_vm12, %v457_v2, %v455_v37  ;;  %1189 = vrcp.f32 %v519_v56  ;;  %v504_v38 = vsel %vm503_vm13, %v1536_v24, %v502_v15  ;;  %vm510_vm15 = vcmp.eq.f32.partialorder %v1575_v60, inf }
 0x162   : > { %1191 = vrcp.f32 %v520_v34  ;;  %v1176_v17 = vpop.eup %1175  ;;  %v522_v40 = vadd.f32 1e-06, %v458_v0  ;;  %v507_v42 = vsel %vm505_vm14, %v506_v27, %v504_v38  ;;  %v607_v43 = vpack.c.bf16 %v592_v14, %v591_v63 }
 0x163   : > { %1193 = vrcp.f32 %v527_v26  ;;  %v529_v45 = vadd.f32 1e-06, %v507_v42  ;;  %v509_v46 = vmul.f32 %v1176_v17, %v1575_v60  ;;  %v513_v47 = vand.u32 2147483648, %v1575_v60 }
 0x164   : > { %1195 = vrcp.f32 %v528_v13  ;;  %v1178_v10 = vpop.eup %1177  ;;  %1077 = vmatprep.mubr.bf16.mxu0 %v607_v43  ;;  %vm512_vm0 = vcmp.eq.f32.partialorder %v1575_v60, 0.0 }
 0x165   : > { %1197 = vrcp.f32 %v521_v51  ;;  %v1180_v50 = vpop.eup %1179  ;;  %v511_v24 = vsel %vm510_vm15, %v1575_v60, %v509_v46  ;;  %v561_v54 = vmul.f32 %v1178_v10, %v1563_v41 }
 0x166   : > { %1199 = vrcp.f32 %v529_v45  ;;  %v1182_v53 = vpop.eup %1181  ;;  %v514_v11 = vsel %vm512_vm0, %v513_v47, %v511_v24  ;;  %v555_v9 = vmul.f32 %v1180_v50, %v1563_v41 }
 0x167   : > { %1201 = vrcp.f32 %v522_v40  ;;  %v1184_v52 = vpop.eup %1183  ;;  %v530_v55 = vadd.f32 1e-06, %v514_v11  ;;  %v562_v16 = vmul.f32 %v1182_v53, %v1563_v41  ;;  %v577_v61 = vmul.f32 %v561_v54, %v1317_v29 }
 0x168   : > { %v556_v1 = vmul.f32 %v1184_v52, %v1563_v41  ;;  %v571_v56 = vmul.f32 %v555_v9, %v1337_v48 }
 0x169   : > { %v1186_v62 = vpop.eup %1185  ;;  %1203 = vrcp.f32 %v530_v55  ;;  %v578_v60 = vmul.f32 %v562_v16, %v1329_v39  ;;  %v599_v18 = vadd.f32 %v1611_v20, %v577_v61 }
 0x16a   : > { %v1188_v23 = vpop.eup %1187  ;;  %v563_v2 = vmul.f32 %v1186_v62, %v1563_v41  ;;  %v572_v6 = vmul.f32 %v556_v1, %v1341_v49  ;;  %v593_v30 = vadd.f32 %v1611_v20, %v571_v56 }
 0x16b   : > { %v1190_v3 = vpop.eup %1189  ;;  %v564_v7 = vmul.f32 %v1188_v23, %v1563_v41  ;;  %v600_v29 = vadd.f32 %v1611_v20, %v578_v60 }
 0x16c   : > { %v1192_v8 = vpop.eup %1191  ;;  %v579_v19 = vmul.f32 %v563_v2, %v1351_v58  ;;  %v557_v48 = vmul.f32 %v1190_v3, %v1563_v41  ;;  %v594_v39 = vadd.f32 %v1611_v20, %v572_v6 }
 0x16d   : > { %v1194_v57 = vpop.eup %1193  ;;  %v580_v27 = vmul.f32 %v564_v7, %v1355_v59  ;;  %v558_v49 = vmul.f32 %v1192_v8, %v1563_v41  ;;  %v611_v34 = vpack.c.bf16 %v600_v29, %v599_v18 }
 0x16e   : > { %v1196_v12 = vpop.eup %1195  ;;  %v601_v44 = vadd.f32 %v1611_v20, %v579_v19  ;;  %v573_v28 = vmul.f32 %v557_v48, %v1365_v4  ;;  %v565_v25 = vmul.f32 %v1194_v57, %v1563_v41  ;;  %v608_v26 = vpack.c.bf16 %v594_v39, %v593_v30 }
 0x16f   : > { %v1198_v58 = vpop.eup %1197  ;;  %v602_v13 = vadd.f32 %v1611_v20, %v580_v27  ;;  %v574_v33 = vmul.f32 %v558_v49, %v1369_v5  ;;  %v566_v37 = vmul.f32 %v1196_v12, %v1563_v41  ;;  %1085 = vmatprep.mubr.bf16.mxu1 %v611_v34 }
 0x170   : > { %v1200_v15 = vpop.eup %1199  ;;  %v595_v59 = vadd.f32 %v1611_v20, %v573_v28  ;;  %v581_v63 = vmul.f32 %v565_v25, %v1379_v21  ;;  %v559_v51 = vmul.f32 %v1198_v58, %v1563_v41  ;;  %1078 = vmatmul.mubr.bf16.vlgmr.msra.gmra.mrb[0].mxu0 %v608_v26 }
 0x171   : > { %v1202_v0 = vpop.eup %1201  ;;  %v612_v4 = vpack.c.bf16 %v602_v13, %v601_v44  ;;  %v596_v14 = vadd.f32 %v1611_v20, %v574_v33  ;;  %v582_v38 = vmul.f32 %v566_v37, %v1383_v22  ;;  %v567_v17 = vmul.f32 %v1200_v15, %v1563_v41 }
 0x172   : > { %v560_v5 = vmul.f32 %v1202_v0, %v1563_v41  ;;  %v575_v40 = vmul.f32 %v559_v51, %v1393_v31  ;;  %v603_v43 = vadd.f32 %v1611_v20, %v581_v63 }
 0x173   : > { %1086 = vmatmul.mubr.bf16.vlgmr.msra.gmra.mrb[0].mxu1 %v612_v4  ;;  %v609_v42 = vpack.c.bf16 %v596_v14, %v595_v59  ;;  %v604_v21 = vadd.f32 %v1611_v20, %v582_v38  ;;  %v1204_v45 = vpop.eup %1203  ;;  %v583_v47 = vmul.f32 %v567_v17, %v1407_v35 }
 0x174   : > { %v576_v46 = vmul.f32 %v560_v5, %v1397_v32  ;;  %v568_v22 = vmul.f32 %v1204_v45, %v1563_v41  ;;  %v597_v50 = vadd.f32 %v1611_v20, %v575_v40 }
 0x175   : > { %1081 = vmatprep.mubr.bf16.mxu0 %v609_v42  ;;  %v613_v10 = vpack.c.bf16 %v604_v21, %v603_v43  ;;  %v605_v53 = vadd.f32 %v1611_v20, %v583_v47 }
 0x176   : > { %v598_v31 = vadd.f32 %v1611_v20, %v576_v46  ;;  %v584_v24 = vmul.f32 %v568_v22, %v1411_v36 }
 0x177   : > { %1089 = vmatprep.mubr.bf16.mxu1 %v613_v10 }
 0x178   : > { %v610_v54 = vpack.c.bf16 %v598_v31, %v597_v50  ;;  %v606_v11 = vadd.f32 %v1611_v20, %v584_v24 }
 0x17a   : > { %1082 = vmatmul.mubr.bf16.gmra.mrb[4].mxu0 %v610_v54  ;;  %v614_v32 = vpack.c.bf16 %v606_v11, %v605_v53 }
 0x17c   : > { %1090 = vmatmul.mubr.bf16.gmra.mrb[4].mxu1 %v614_v32 }
 0x243   : > { %v1079_v9 = vpop.f32.mrb[0].mxu0 }
 0x244   : > { %v713_v41 = vpop.f32.mrb[1].mxu0 }
 0x245   : > { %v1080_v35 = vpop.f32.mrb[2].mxu0 }
 0x246   : > { %v1087_v52 = vpop.f32.mrb[0].mxu1  ;;  %v1006_v55 = vpack.c.bf16 %v1080_v35, %v1079_v9  ;;  %v716_v16 = vpop.f32.mrb[3].mxu0 }
 0x247   : > { %v745_v36 = vpop.f32.mrb[1].mxu1  ;;  %v1001_v61 = vpack.c.bf16 %v716_v16, %v713_v41 }
 0x248   : > { %v1088_v62 = vpop.f32.mrb[2].mxu1  ;;  %1038 = vst [vmem:[%s235_s24 + $0x8] sm:$0xff] %v1006_v55  }
 0x249   : > { %v1026_v1 = vpack.c.bf16 %v1088_v62, %v1087_v52  ;;  %v748_v20 = vpop.f32.mrb[3].mxu1  ;;  %1002 = vst [vmem:[%s235_s24] sm:$0xff] %v1001_v61  }
 0x24a   : > { %v1021_v56 = vpack.c.bf16 %v748_v20, %v745_v36 }
 0x24b   : > { %1042 = vst [vmem:[%s235_s24 + $0x28] sm:$0xff] %v1026_v1  }
 0x24c   : > { %1041 = vst [vmem:[%s235_s24 + $0x20] sm:$0xff] %v1021_v56  }
 0x24d   : > { %v1083_v23 = vpop.f32.mrb[4].mxu0 }
 0x24e   : > { %v729_v60 = vpop.f32.mrb[5].mxu0 }
 0x24f   : > { %v1084_v2 = vpop.f32.mrb[6].mxu0  ;;  %v1091_v7 = vpop.f32.mrb[4].mxu1 }
 0x250   : > { %v1016_v3 = vpack.c.bf16 %v1084_v2, %v1083_v23  ;;  %v732_v6 = vpop.f32.mrb[7].mxu0  ;;  %v761_v18 = vpop.f32.mrb[5].mxu1 }
 0x251   : > { %v1011_v8 = vpack.c.bf16 %v732_v6, %v729_v60  ;;  %v1092_v29 = vpop.f32.mrb[6].mxu1 }
 0x252   : > { %1040 = vst [vmem:[%s235_s24 + $0x18] sm:$0xff] %v1016_v3   ;;  %v1036_v19 = vpack.c.bf16 %v1092_v29, %v1091_v7  ;;  %v764_v48 = vpop.f32.mrb[7].mxu1 }
 0x253   : > { %1039 = vst [vmem:[%s235_s24 + $0x10] sm:$0xff] %v1011_v8   ;;  %v1031_v57 = vpack.c.bf16 %v764_v48, %v761_v18 }
 0x254   : > { %1044 = vst [vmem:[%s235_s24 + $0x38] sm:$0xff] %v1036_v19  }
 0x255   : > { %1043 = vst [vmem:[%s235_s24 + $0x30] sm:$0xff] %v1031_v57  }
 0x256 PF: > { %s14_s17 = sadd.s32 1, %s1227_s17   ;;  %s1695_s15 = smov %s1223_s16 }
 0x257   : > { %p11_p5 = scmp.ge.s32.totalorder %s14_s17, 4   ;;  %s1696_s16 = smov %s1698_s18 }
 0x259   :  { %13 = sbr.rel (!%p11_p5) target bundleno = 2 (0x2), region = 66 }

// kernel: transformer_block.3
= control target key start
LH: loop header
LB: loop body
LE: loop exit
PB: predicated region body
PF: predicated region fallthrough
CT: control target
= control target key end

     0   :  { %s1379_s21 = smov 0   ;;  %s1381_s22 = smov 0   ;;  %s1860_s0 = inlined_call_operand.vmem [shape: f32[2,128,128], index: 0, kind: input, shape index: {}]   ;;  %s1861_s1 = inlined_call_operand.vmem [shape: bf16[2,128,128], index: 1, kind: input, shape index: {}]   ;;  %s1862_s2 = inlined_call_operand.vmem [shape: bf16[2,128,128], index: 2, kind: input, shape index: {}]   ;;  %s1863_s3 = inlined_call_operand.vmem [shape: f32[1,128], index: 3, kind: input, shape index: {}]   ;;  %s1864_s4 = inlined_call_operand.vmem [shape: f32[1,128], index: 4, kind: input, shape index: {}]   ;;  %s1865_s5 = inlined_call_operand.vmem [shape: f32[1,128], index: 5, kind: input, shape index: {}]   ;;  %s1866_s6 = inlined_call_operand.vmem [shape: f32[2,128,128], index: 6, kind: output, shape index: {}]  }
   0x1   :  { %s1383_s23 = smov 0  }
   0x2 LB: > { %s28_s24 = sadd.s32 1, %s1338_s22  ;;  %p1118_p0 = scmp.ge.s32.totalorder %s1342_s23, 1  ;;  %s1342_s23 = sphi %s1383_s23, %s16_s23   ;;  %s1338_s22 = sphi %s1381_s22, %s1868_s22   ;;  %s1334_s21 = sphi %s1379_s21, %s1867_s21  }
   0x3   : > { %p30_p1 = scmp.ge.s32.totalorder %s28_s24, 2  ;;  %p260_p2 = scmp.lt.s32.totalorder %s1342_s23, 3 }
   0x5   : > { %s1870_s24 = smov (%p30_p1, %s28_s24), 0  ;;  %p261_p3 = pnand %p1118_p0, %p260_p2 }
   0x6   : > { %p313_p4 = scmp.lt.s32.totalorder (!%p261_p3), %s1334_s21, 1  ;;  %v1430_v16 = vld [vmem:[%s1863_s3] ss:$0 sm:$0xff] (!%p261_p3) }
   0x7   : > { %264 = sbr.rel (%p261_p3) target bundleno = 638 (0x27e), region = 44 }
   0xe   : > { %s1872_s21 = smov (!%p313_p4, %s1334_s21), 1 }
   0xf   : > { %s1149_s25 = sshll.u32 %s1872_s21, 6  ;;  %s1148_s8 = sshll.u32 %s1872_s21, 7 }
  0x10   : > { %s1403_s28 = scalar_lea.vmem %s1862_s2, %s1149_s25  ;;  %s1411_s7 = scalar_lea.vmem %s1861_s1, %s1149_s25 }
  0x11   : > { %v1240_v0 = vld [vmem:[%s1403_s28] sm:$0xff]   ;;  %v1241_v1 = vld [vmem:[%s1403_s28 + $0x8] sm:$0xff]   ;;  %v1242_v2 = vld [vmem:[%s1403_s28 + $0x10] sm:$0xff]   ;;  %s1437_s13 = scalar_lea.vmem %s1860_s0, %s1148_s8  ;;  %s1729_s20 = scalar_lea.vmem %s1866_s6, %s1148_s8 }
  0x12   : > { %1168 = vmatprep.subr.bf16.mxu0 %v1240_v0  ;;  %1200 = vmatprep.subr.bf16.mxu1 %v1240_v0  ;;  %v1243_v3 = vld [vmem:[%s1403_s28 + $0x18] sm:$0xff]   ;;  %v1248_v4 = vld [vmem:[%s1411_s7] sm:$0xff]   ;;  %v1245_v7 = vld [vmem:[%s1403_s28 + $0x28] sm:$0xff]  }
  0x13   : > { %1169 = vmatpush3.bf16.msra.mxu0 %v1240_v0  ;;  %1208 = vmatpush3.bf16.msra.mxu1 %v1240_v0  ;;  %v1249_v5 = vld [vmem:[%s1411_s7 + $0x20] sm:$0xff]   ;;  %v1246_v8 = vld [vmem:[%s1403_s28 + $0x30] sm:$0xff]   ;;  %v1247_v9 = vld [vmem:[%s1403_s28 + $0x38] sm:$0xff]  }
  0x14   : > { %1170 = vmatprep.subr.bf16.mxu0 %v1241_v1  ;;  %1201 = vmatprep.subr.bf16.mxu1 %v1241_v1  ;;  %v1244_v6 = vld [vmem:[%s1403_s28 + $0x20] sm:$0xff]   ;;  %v1250_v10 = vld [vmem:[%s1411_s7 + $0x8] sm:$0xff]   ;;  %v1252_v12 = vld [vmem:[%s1411_s7 + $0x10] sm:$0xff]  }
  0x15   : > { %1184 = vmatprep.mubr.bf16.mxu0 %v1248_v4  ;;  %1192 = vmatprep.mubr.bf16.mxu1 %v1249_v5  ;;  %v1251_v11 = vld [vmem:[%s1411_s7 + $0x28] sm:$0xff]   ;;  %v1254_v13 = vld [vmem:[%s1411_s7 + $0x30] sm:$0xff]   ;;  %v1253_v14 = vld [vmem:[%s1411_s7 + $0x18] sm:$0xff]  }
  0x16   : > { %v1255_v15 = vld [vmem:[%s1411_s7 + $0x38] sm:$0xff]   ;;  %v606_v26 = vld [vmem:[%s1437_s13 + $0x50] sm:$0xff]  ;;  %v596_v40 = vld [vmem:[%s1437_s13] sm:$0xff] }
  0x17   : > { %1171 = vmatpush3.bf16.msra.mxu0 %v1241_v1  ;;  %1209 = vmatpush3.bf16.msra.mxu1 %v1241_v1  ;;  %v598_v27 = vld [vmem:[%s1437_s13 + $0x10] sm:$0xff]  ;;  %v599_v39 = vld [vmem:[%s1437_s13 + $0x18] sm:$0xff]  ;;  %v604_v52 = vld [vmem:[%s1437_s13 + $0x40] sm:$0xff] }
  0x18   : > { %1172 = vmatprep.subr.bf16.mxu0 %v1242_v2  ;;  %1202 = vmatprep.subr.bf16.mxu1 %v1242_v2  ;;  %v607_v51 = vld [vmem:[%s1437_s13 + $0x58] sm:$0xff]  ;;  %v605_v63 = vld [vmem:[%s1437_s13 + $0x48] sm:$0xff]  ;;  %v602_v4 = vld [vmem:[%s1437_s13 + $0x30] sm:$0xff] }
  0x19   : > { %v597_v0 = vld [vmem:[%s1437_s13 + $0x8] sm:$0xff] }
  0x1b   : > { %1173 = vmatpush3.bf16.msra.mxu0 %v1242_v2  ;;  %1210 = vmatpush3.bf16.msra.mxu1 %v1242_v2 }
  0x1c   : > { %1174 = vmatprep.subr.bf16.mxu0 %v1243_v3  ;;  %1203 = vmatprep.subr.bf16.mxu1 %v1243_v3 }
  0x1f   : > { %1175 = vmatpush3.bf16.msra.mxu0 %v1243_v3  ;;  %1211 = vmatpush3.bf16.msra.mxu1 %v1243_v3  ;;  %v603_v3 = vld [vmem:[%s1437_s13 + $0x38] sm:$0xff] }
  0x20   : > { %1176 = vmatprep.subr.bf16.mxu0 %v1244_v6  ;;  %1204 = vmatprep.subr.bf16.mxu1 %v1244_v6 }
  0x23   : > { %1177 = vmatpush3.bf16.msra.mxu0 %v1244_v6  ;;  %1212 = vmatpush3.bf16.msra.mxu1 %v1244_v6 }
  0x24   : > { %1178 = vmatprep.subr.bf16.mxu0 %v1245_v7  ;;  %1205 = vmatprep.subr.bf16.mxu1 %v1245_v7 }
  0x27   : > { %1179 = vmatpush3.bf16.msra.mxu0 %v1245_v7  ;;  %1213 = vmatpush3.bf16.msra.mxu1 %v1245_v7 }
  0x28   : > { %1180 = vmatprep.subr.bf16.mxu0 %v1246_v8  ;;  %1206 = vmatprep.subr.bf16.mxu1 %v1246_v8 }
  0x2b   : > { %1181 = vmatpush3.bf16.msra.mxu0 %v1246_v8  ;;  %1214 = vmatpush3.bf16.msra.mxu1 %v1246_v8 }
  0x2c   : > { %1182 = vmatprep.subr.bf16.mxu0 %v1247_v9  ;;  %1207 = vmatprep.subr.bf16.mxu1 %v1247_v9 }
  0x2f   : > { %1183 = vmatpush3.bf16.msra.mxu0 %v1247_v9  ;;  %1215 = vmatpush3.bf16.msra.mxu1 %v1247_v9 }
  0x32   : > { %1185 = vmatmul.mubr.bf16.vlgmr.msra.gmra.mrb[0].mxu0 %v1250_v10  ;;  %1193 = vmatmul.mubr.bf16.vlgmr.msra.gmra.mrb[0].mxu1 %v1251_v11 }
  0x33   : > { %1188 = vmatprep.mubr.bf16.mxu0 %v1252_v12  ;;  %1196 = vmatprep.mubr.bf16.mxu1 %v1254_v13 }
  0x3a   : > { %1189 = vmatmul.mubr.bf16.gmra.mrb[4].mxu0 %v1253_v14  ;;  %1197 = vmatmul.mubr.bf16.gmra.mrb[4].mxu1 %v1255_v15  ;;  %v601_v15 = vld [vmem:[%s1437_s13 + $0x28] sm:$0xff] }
 0x105   : > { %v1186_v17 = vpop.f32.mrb[0].mxu0  ;;  %v1194_v18 = vpop.f32.mrb[0].mxu1 }
 0x106   : > { %v526_v19 = vadd.f32 %v1186_v17, %v1430_v16  ;;  %v558_v20 = vadd.f32 %v1194_v18, %v1430_v16  ;;  %v517_v21 = vpop.f32.mrb[1].mxu0  ;;  %v549_v22 = vpop.f32.mrb[1].mxu1  ;;  %v600_v17 = vld [vmem:[%s1437_s13 + $0x20] sm:$0xff] }
 0x107   : > { %v518_v23 = vadd.f32 %v1430_v16, %v517_v21  ;;  %v1187_v24 = vpop.f32.mrb[2].mxu0  ;;  %v1195_v25 = vpop.f32.mrb[2].mxu1  ;;  %v550_v33 = vadd.f32 %v1430_v16, %v549_v22  ;;  %v608_v21 = vld [vmem:[%s1437_s13 + $0x60] sm:$0xff] }
 0x108   : > { %v582_v28 = vmax.f32 %v526_v19, 0.0  ;;  %v590_v29 = vmax.f32 %v558_v20, 0.0  ;;  %v529_v30 = vadd.f32 %v1187_v24, %v1430_v16  ;;  %v520_v31 = vpop.f32.mrb[3].mxu0  ;;  %v552_v32 = vpop.f32.mrb[3].mxu1  ;;  %v561_v34 = vadd.f32 %v1195_v25, %v1430_v16  ;;  %v609_v20 = vld [vmem:[%s1437_s13 + $0x68] sm:$0xff] }
 0x109   : > { %v580_v35 = vmax.f32 %v518_v23, 0.0  ;;  %v588_v41 = vmax.f32 %v550_v33, 0.0  ;;  %v521_v42 = vadd.f32 %v1430_v16, %v520_v31  ;;  %v553_v46 = vadd.f32 %v1430_v16, %v552_v32  ;;  %v610_v31 = vld [vmem:[%s1437_s13 + $0x70] sm:$0xff] }
 0x10a   : > { %v583_v36 = vmax.f32 %v529_v30, 0.0  ;;  %v1447_v37 = vadd.f32 %v606_v26, %v590_v29  ;;  %v1449_v38 = vadd.f32 %v598_v27, %v582_v28  ;;  %v591_v45 = vmax.f32 %v561_v34, 0.0  ;;  %v611_v30 = vld [vmem:[%s1437_s13 + $0x78] sm:$0xff] }
 0x10b   : > { %v1459_v48 = vadd.f32 %v596_v40, %v580_v35  ;;  %v581_v59 = vmax.f32 %v521_v42, 0.0  ;;  %v589_v60 = vmax.f32 %v553_v46, 0.0  ;;  %v1469_v62 = vadd.f32 %v604_v52, %v588_v41 }
 0x10c   : > { %650 = vadd.xlane.f32.xlu0 %v1447_v37  ;;  %634 = vadd.xlane.f32.xlu1 %v1449_v38  ;;  %v1457_v47 = vadd.f32 %v599_v39, %v583_v36  ;;  %v1467_v61 = vadd.f32 %v607_v51, %v591_v45  ;;  %v678_v33 = vlaneseq }
 0x10d   : > { %v1190_v43 = vpop.f32.mrb[4].mxu0  ;;  %v1198_v44 = vpop.f32.mrb[4].mxu1  ;;  %v1479_v7 = vadd.f32 %v605_v63, %v589_v60  ;;  %v1481_v8 = vadd.f32 %v597_v0, %v581_v59 }
 0x10e   : > { %v533_v49 = vpop.f32.mrb[5].mxu0  ;;  %v565_v50 = vpop.f32.mrb[5].mxu1  ;;  %v542_v55 = vadd.f32 %v1190_v43, %v1430_v16  ;;  %v574_v22 = vadd.f32 %v1198_v44, %v1430_v16  ;;  %v1519_v34 = vand.u32 127, %v678_v33 }
 0x10f   : > { %v1191_v53 = vpop.f32.mrb[6].mxu0  ;;  %v1199_v54 = vpop.f32.mrb[6].mxu1  ;;  %v534_v5 = vadd.f32 %v1430_v16, %v533_v49  ;;  %v566_v9 = vadd.f32 %v1430_v16, %v565_v50 }
 0x110   : > { %636 = vadd.xlane.f32.xlu1 %v1457_v47  ;;  %630 = vadd.xlane.f32.xlu0 %v1459_v48  ;;  %v545_v56 = vadd.f32 %v1191_v53, %v1430_v16  ;;  %v536_v57 = vpop.f32.mrb[7].mxu0  ;;  %v568_v58 = vpop.f32.mrb[7].mxu1  ;;  %v586_v1 = vmax.f32 %v542_v55, 0.0  ;;  %v577_v23 = vadd.f32 %v1199_v54, %v1430_v16  ;;  %v594_v28 = vmax.f32 %v574_v22, 0.0 }
 0x111   : > { %v537_v6 = vadd.f32 %v1430_v16, %v536_v57  ;;  %v569_v12 = vadd.f32 %v1430_v16, %v568_v58  ;;  %v584_v13 = vmax.f32 %v534_v5, 0.0  ;;  %v592_v18 = vmax.f32 %v566_v9, 0.0 }
 0x112   : > { %v587_v2 = vmax.f32 %v545_v56, 0.0  ;;  %v1488_v11 = vadd.f32 %v602_v4, %v586_v1  ;;  %v595_v29 = vmax.f32 %v577_v23, 0.0  ;;  %v1515_v32 = vadd.f32 %v610_v31, %v594_v28 }
 0x113   : > { %v585_v14 = vmax.f32 %v537_v6, 0.0  ;;  %v593_v19 = vmax.f32 %v569_v12, 0.0  ;;  %v1501_v25 = vadd.f32 %v600_v17, %v584_v13  ;;  %v1507_v27 = vadd.f32 %v608_v21, %v592_v18 }
 0x114   : > { %652 = vadd.xlane.f32.xlu1 %v1467_v61  ;;  %646 = vadd.xlane.f32.xlu0 %v1469_v62  ;;  %v1486_v10 = vadd.f32 %v603_v3, %v587_v2  ;;  %v1513_v16 = vadd.f32 %v611_v30, %v595_v29  ;;  %vm680_vm0 = vcmp.lt.s32.totalorder %v1519_v34, 32 }
 0x115   : > { %v1499_v24 = vadd.f32 %v601_v15, %v585_v14  ;;  %v1505_v26 = vadd.f32 %v609_v20, %v593_v19 }
 0x118   : > { %648 = vadd.xlane.f32.xlu1 %v1479_v7  ;;  %632 = vadd.xlane.f32.xlu0 %v1481_v8 }
 0x11c   : > { %644 = vadd.xlane.f32.xlu1 %v1486_v10  ;;  %642 = vadd.xlane.f32.xlu0 %v1488_v11 }
 0x120   : > { %640 = vadd.xlane.f32.xlu1 %v1499_v24  ;;  %638 = vadd.xlane.f32.xlu0 %v1501_v25 }
 0x124   : > { %656 = vadd.xlane.f32.xlu1 %v1505_v26  ;;  %654 = vadd.xlane.f32.xlu0 %v1507_v27 }
 0x128   : > { %660 = vadd.xlane.f32.xlu1 %v1513_v16  ;;  %658 = vadd.xlane.f32.xlu0 %v1515_v32 }
 0x199   : > { %v651_v35 = vpop.xlane.xlu0 %650  ;;  %v635_v36 = vpop.xlane.xlu1 %634 }
 0x19a   : > { %v672_v39 = vmul.f32 0.03125, %v651_v35  ;;  %v664_v40 = vmul.f32 0.03125, %v635_v36 }
 0x19c   : > { %v691_v41 = vsub.f32 %v1447_v37, %v672_v39  ;;  %v683_v42 = vsub.f32 %v1449_v38, %v664_v40 }
 0x19d   : > { %v637_v43 = vpop.xlane.xlu1 %636  ;;  %v631_v44 = vpop.xlane.xlu0 %630 }
 0x19e   : > { %v665_v45 = vmul.f32 0.03125, %v637_v43  ;;  %v662_v46 = vmul.f32 0.03125, %v631_v44  ;;  %v1526_v49 = vsel %vm680_vm0, %v683_v42, 0.0  ;;  %v1534_v37 = vsel %vm680_vm0, %v691_v41, 0.0 }
 0x19f   : > { %v715_v50 = vmul.f32 %v1526_v49, %v1526_v49 }
 0x1a0   : > { %v684_v51 = vsub.f32 %v1457_v47, %v665_v45  ;;  %v681_v52 = vsub.f32 %v1459_v48, %v662_v46  ;;  %v723_v47 = vmul.f32 %v1534_v37, %v1534_v37 }
 0x1a1   : > { %v653_v38 = vpop.xlane.xlu1 %652  ;;  %733 = vadd.xlane.f32.xlu0 %v715_v50  ;;  %v647_v53 = vpop.xlane.xlu0 %646 }
 0x1a2   : > { %v673_v54 = vmul.f32 0.03125, %v653_v38  ;;  %v670_v55 = vmul.f32 0.03125, %v647_v53  ;;  %v1538_v56 = vsel %vm680_vm0, %v684_v51, 0.0  ;;  %v1548_v59 = vsel %vm680_vm0, %v681_v52, 0.0 }
 0x1a3   : > { %v716_v57 = vmul.f32 %v1538_v56, %v1538_v56 }
 0x1a4   : > { %v692_v48 = vsub.f32 %v1467_v61, %v673_v54  ;;  %v689_v58 = vsub.f32 %v1469_v62, %v670_v55  ;;  %v713_v61 = vmul.f32 %v1548_v59, %v1548_v59 }
 0x1a5   : > { %735 = vadd.xlane.f32.xlu1 %v716_v57  ;;  %v649_v60 = vpop.xlane.xlu1 %648  ;;  %749 = vadd.xlane.f32.xlu0 %v723_v47  ;;  %v633_v63 = vpop.xlane.xlu0 %632 }
 0x1a6   : > { %v671_v0 = vmul.f32 0.03125, %v649_v60  ;;  %v663_v1 = vmul.f32 0.03125, %v633_v63  ;;  %v1552_v2 = vsel %vm680_vm0, %v692_v48, 0.0  ;;  %v1562_v5 = vsel %vm680_vm0, %v689_v58, 0.0 }
 0x1a7   : > { %v724_v3 = vmul.f32 %v1552_v2, %v1552_v2  ;;  %v721_v15 = vmul.f32 %v1562_v5, %v1562_v5 }
 0x1a8   : > { %v690_v62 = vsub.f32 %v1479_v7, %v671_v0  ;;  %v682_v4 = vsub.f32 %v1481_v8, %v663_v1 }
 0x1a9   : > { %751 = vadd.xlane.f32.xlu1 %v724_v3  ;;  %v645_v6 = vpop.xlane.xlu1 %644  ;;  %729 = vadd.xlane.f32.xlu0 %v713_v61  ;;  %v643_v9 = vpop.xlane.xlu0 %642 }
 0x1aa   : > { %v669_v12 = vmul.f32 0.03125, %v645_v6  ;;  %v668_v13 = vmul.f32 0.03125, %v643_v9  ;;  %v1566_v14 = vsel %vm680_vm0, %v682_v4, 0.0  ;;  %v1576_v18 = vsel %vm680_vm0, %v690_v62, 0.0 }
 0x1ab   : > { %v714_v7 = vmul.f32 %v1566_v14, %v1566_v14  ;;  %v722_v28 = vmul.f32 %v1576_v18, %v1576_v18 }
 0x1ac   : > { %v688_v8 = vsub.f32 %v1486_v10, %v669_v12  ;;  %v687_v17 = vsub.f32 %v1488_v11, %v668_v13 }
 0x1ad   : > { %v641_v19 = vpop.xlane.xlu1 %640  ;;  %745 = vadd.xlane.f32.xlu0 %v721_v15  ;;  %731 = vadd.xlane.f32.xlu1 %v714_v7  ;;  %v639_v20 = vpop.xlane.xlu0 %638 }
 0x1ae   : > { %v667_v21 = vmul.f32 0.03125, %v641_v19  ;;  %v666_v22 = vmul.f32 0.03125, %v639_v20  ;;  %v1580_v23 = vsel %vm680_vm0, %v687_v17, 0.0  ;;  %v1590_v30 = vsel %vm680_vm0, %v688_v8, 0.0 }
 0x1af   : > { %v719_v10 = vmul.f32 %v1580_v23, %v1580_v23  ;;  %v720_v40 = vmul.f32 %v1590_v30, %v1590_v30 }
 0x1b0   : > { %v686_v11 = vsub.f32 %v1499_v24, %v667_v21  ;;  %v685_v29 = vsub.f32 %v1501_v25, %v666_v22 }
 0x1b1   : > { %v657_v31 = vpop.xlane.xlu1 %656  ;;  %747 = vadd.xlane.f32.xlu1 %v722_v28  ;;  %741 = vadd.xlane.f32.xlu0 %v719_v10  ;;  %v655_v33 = vpop.xlane.xlu0 %654 }
 0x1b2   : > { %v675_v35 = vmul.f32 0.03125, %v657_v31  ;;  %v674_v36 = vmul.f32 0.03125, %v655_v33  ;;  %v1594_v39 = vsel %vm680_vm0, %v685_v29, 0.0  ;;  %v1604_v42 = vsel %vm680_vm0, %v686_v11, 0.0 }
 0x1b3   : > { %v717_v24 = vmul.f32 %v1594_v39, %v1594_v39  ;;  %v718_v51 = vmul.f32 %v1604_v42, %v1604_v42 }
 0x1b4   : > { %v694_v25 = vsub.f32 %v1505_v26, %v675_v35  ;;  %v693_v41 = vsub.f32 %v1507_v27, %v674_v36 }
 0x1b5   : > { %v661_v43 = vpop.xlane.xlu1 %660  ;;  %743 = vadd.xlane.f32.xlu1 %v720_v40  ;;  %737 = vadd.xlane.f32.xlu0 %v717_v24  ;;  %v659_v44 = vpop.xlane.xlu0 %658 }
 0x1b6   : > { %v677_v45 = vmul.f32 0.03125, %v661_v43  ;;  %v676_v46 = vmul.f32 0.03125, %v659_v44  ;;  %v1608_v50 = vsel %vm680_vm0, %v693_v41, 0.0  ;;  %v1618_v38 = vsel %vm680_vm0, %v694_v25, 0.0 }
 0x1b7   : > { %v725_v26 = vmul.f32 %v1608_v50, %v1608_v50  ;;  %v726_v54 = vmul.f32 %v1618_v38, %v1618_v38 }
 0x1b8   : > { %v696_v27 = vsub.f32 %v1513_v16, %v677_v45  ;;  %v695_v52 = vsub.f32 %v1515_v32, %v676_v46 }
 0x1b9   : > { %739 = vadd.xlane.f32.xlu1 %v718_v51  ;;  %753 = vadd.xlane.f32.xlu0 %v725_v26 }
 0x1ba   : > { %v1622_v53 = vsel %vm680_vm0, %v695_v52, 0.0  ;;  %v1630_v16 = vsel %vm680_vm0, %v696_v27, 0.0 }
 0x1bb   : > { %v727_v55 = vmul.f32 %v1622_v53, %v1622_v53  ;;  %v728_v32 = vmul.f32 %v1630_v16, %v1630_v16 }
 0x1bd   : > { %755 = vadd.xlane.f32.xlu1 %v726_v54  ;;  %757 = vadd.xlane.f32.xlu0 %v727_v55 }
 0x1c1   : > { %759 = vadd.xlane.f32.xlu1 %v728_v32 }
 0x22e   : > { %v734_v57 = vpop.xlane.xlu0 %733 }
 0x22f   : > { %v763_v47 = vmul.f32 0.032258064, %v734_v57 }
 0x231   : > { %1256 = vrsqrt.f32 %v763_v47  ;;  %vm793_vm1 = vcmp.eq.f32.partialorder %v763_v47, inf  ;;  %vm795_vm2 = vcmp.eq.f32.partialorder %v763_v47, 0.0  ;;  %v796_v13 = vand.u32 2147483648, %v763_v47 }
 0x232   : > { %v736_v48 = vpop.xlane.xlu1 %735  ;;  %v750_v58 = vpop.xlane.xlu0 %749 }
 0x233   : > { %v764_v60 = vmul.f32 0.032258064, %v736_v48  ;;  %v771_v63 = vmul.f32 0.032258064, %v750_v58 }
 0x235   : > { %1258 = vrsqrt.f32 %v764_v60  ;;  %vm800_vm3 = vcmp.eq.f32.partialorder %v764_v60, inf  ;;  %vm802_vm4 = vcmp.eq.f32.partialorder %v764_v60, 0.0  ;;  %v803_v7 = vand.u32 2147483648, %v764_v60 }
 0x236   : > { %1260 = vrsqrt.f32 %v771_v63  ;;  %v752_v0 = vpop.xlane.xlu1 %751  ;;  %v730_v1 = vpop.xlane.xlu0 %729  ;;  %vm849_vm5 = vcmp.eq.f32.partialorder %v771_v63, inf  ;;  %vm851_vm6 = vcmp.eq.f32.partialorder %v771_v63, 0.0  ;;  %v852_v29 = vand.u32 2147483648, %v771_v63 }
 0x237   : > { %v1634_v34 = vmul.f32 0.032258064, %v752_v0  ;;  %v1636_v3 = vmul.f32 0.032258064, %v730_v1 }
 0x239   : > { %1262 = vrsqrt.f32 %v1634_v34  ;;  %vm856_vm7 = vcmp.eq.f32.partialorder %v1634_v34, inf  ;;  %vm858_vm8 = vcmp.eq.f32.partialorder %v1634_v34, 0.0  ;;  %v859_v33 = vand.u32 2147483648, %v1634_v34 }
 0x23a   : > { %1264 = vrsqrt.f32 %v1636_v3  ;;  %v732_v61 = vpop.xlane.xlu1 %731  ;;  %v746_v62 = vpop.xlane.xlu0 %745  ;;  %vm779_vm9 = vcmp.eq.f32.partialorder %v1636_v3, inf  ;;  %vm781_vm10 = vcmp.eq.f32.partialorder %v1636_v3, 0.0  ;;  %v782_v41 = vand.u32 2147483648, %v1636_v3 }
 0x23b   : > { %v1257_v4 = vpop.eup %1256  ;;  %v1640_v6 = vmul.f32 0.032258064, %v732_v61  ;;  %v1642_v9 = vmul.f32 0.032258064, %v746_v62 }
 0x23c   : > { %v792_v12 = vmul.f32 %v1257_v4, %v763_v47  ;;  %v1690_v4 = vld [vmem:[%s1864_s4] ss:$0 sm:$0xff] }
 0x23d   : > { %1266 = vrsqrt.f32 %v1640_v6  ;;  %vm786_vm11 = vcmp.eq.f32.partialorder %v1640_v6, inf  ;;  %vm788_vm12 = vcmp.eq.f32.partialorder %v1640_v6, 0.0  ;;  %v789_v55 = vand.u32 2147483648, %v1640_v6 }
 0x23e   : > { %v794_v15 = vsel %vm793_vm1, %v763_v47, %v792_v12  ;;  %1268 = vrsqrt.f32 %v1642_v9  ;;  %v748_v8 = vpop.xlane.xlu1 %747  ;;  %v742_v17 = vpop.xlane.xlu0 %741  ;;  %vm835_vm13 = vcmp.eq.f32.partialorder %v1642_v9, inf  ;;  %vm837_vm14 = vcmp.eq.f32.partialorder %v1642_v9, 0.0 }
 0x23f   : > { %v1259_v19 = vpop.eup %1258  ;;  %v797_v20 = vsel %vm795_vm2, %v796_v13, %v794_v15  ;;  %v1646_v21 = vmul.f32 0.032258064, %v748_v8  ;;  %v1648_v22 = vmul.f32 0.032258064, %v742_v17  ;;  %v838_v62 = vand.u32 2147483648, %v1642_v9 }
 0x240   : > { %v1261_v28 = vpop.eup %1260  ;;  %v891_v10 = vadd.f32 1e-06, %v797_v20  ;;  %v799_v11 = vmul.f32 %v1259_v19, %v764_v60 }
 0x241   : > { %v848_v31 = vmul.f32 %v1261_v28, %v771_v63  ;;  %1270 = vrsqrt.f32 %v1646_v21  ;;  %vm842_vm15 = vcmp.eq.f32.partialorder %v1646_v21, inf  ;;  %vm844_vm0 = vcmp.eq.f32.partialorder %v1646_v21, 0.0 }
 0x242   : > { %1272 = vrcp.f32 %v891_v10  ;;  %v801_v35 = vsel %vm800_vm3, %v764_v60, %v799_v11  ;;  %v744_v36 = vpop.xlane.xlu1 %743  ;;  %v738_v51 = vpop.xlane.xlu0 %737  ;;  %vm821_vm1 = vcmp.eq.f32.partialorder %v1648_v22, inf  ;;  %vm823_vm2 = vcmp.eq.f32.partialorder %v1648_v22, 0.0 }
 0x243   : > { %v1263_v40 = vpop.eup %1262  ;;  %v804_v24 = vsel %vm802_vm4, %v803_v7, %v801_v35  ;;  %v850_v25 = vsel %vm849_vm5, %v771_v63, %v848_v31  ;;  %1274 = vrsqrt.f32 %v1648_v22  ;;  %v1666_v52 = vmul.f32 0.032258064, %v744_v36 }
 0x244   : > { %v1265_v43 = vpop.eup %1264  ;;  %v892_v44 = vadd.f32 1e-06, %v804_v24  ;;  %v853_v45 = vsel %vm851_vm6, %v852_v29, %v850_v25  ;;  %v855_v46 = vmul.f32 %v1263_v40, %v1634_v34  ;;  %v1678_v48 = vmul.f32 0.032258064, %v738_v51 }
 0x245   : > { %v899_v26 = vadd.f32 1e-06, %v853_v45  ;;  %v778_v27 = vmul.f32 %v1265_v43, %v1636_v3  ;;  %v845_v7 = vand.u32 2147483648, %v1646_v21  ;;  %v824_v35 = vand.u32 2147483648, %v1648_v22 }
 0x246   : > { %1276 = vrcp.f32 %v892_v44  ;;  %v857_v54 = vsel %vm856_vm7, %v1634_v34, %v855_v46  ;;  %v740_v1 = vpop.xlane.xlu1 %739  ;;  %v754_v28 = vpop.xlane.xlu0 %753  ;;  %vm828_vm3 = vcmp.eq.f32.partialorder %v1666_v52, inf  ;;  %vm830_vm4 = vcmp.eq.f32.partialorder %v1666_v52, 0.0 }
 0x247   : > { %v1267_v32 = vpop.eup %1266  ;;  %1278 = vrcp.f32 %v899_v26  ;;  %v860_v57 = vsel %vm858_vm8, %v859_v33, %v857_v54  ;;  %v780_v47 = vsel %vm779_vm9, %v1636_v3, %v778_v27  ;;  %v1707_v29 = vmul.f32 0.032258064, %v740_v1 }
 0x248   : > { %v1269_v58 = vpop.eup %1268  ;;  %v900_v60 = vadd.f32 1e-06, %v860_v57  ;;  %v783_v63 = vsel %vm781_vm10, %v782_v41, %v780_v47  ;;  %v785_v0 = vmul.f32 %v1267_v32, %v1640_v6  ;;  %1280 = vrsqrt.f32 %v1666_v52 }
 0x249   : > { %v889_v61 = vadd.f32 1e-06, %v783_v63  ;;  %v834_v34 = vmul.f32 %v1269_v58, %v1642_v9  ;;  %v1722_v25 = vmul.f32 0.032258064, %v754_v28  ;;  %v831_v47 = vand.u32 2147483648, %v1666_v52 }
 0x24a   : > { %1282 = vrcp.f32 %v900_v60  ;;  %v787_v3 = vsel %vm786_vm11, %v1640_v6, %v785_v0  ;;  %v756_v36 = vpop.xlane.xlu1 %755  ;;  %vm807_vm5 = vcmp.eq.f32.partialorder %v1678_v48, inf  ;;  %v758_v0 = vpop.xlane.xlu0 %757  ;;  %vm809_vm6 = vcmp.eq.f32.partialorder %v1678_v48, 0.0 }
 0x24b   : > { %v1271_v12 = vpop.eup %1270  ;;  %1284 = vrcp.f32 %v889_v61  ;;  %v790_v13 = vsel %vm788_vm12, %v789_v55, %v787_v3  ;;  %v836_v15 = vsel %vm835_vm13, %v1642_v9, %v834_v34  ;;  %v1712_v9 = vld [vmem:[%s1865_s5] ss:$0 sm:$0xff]  ;;  %v1736_v51 = vmul.f32 0.032258064, %v756_v36 }
 0x24c   : > { %v1273_v8 = vpop.eup %1272  ;;  %v890_v17 = vadd.f32 1e-06, %v790_v13  ;;  %v839_v19 = vsel %vm837_vm14, %v838_v62, %v836_v15  ;;  %v841_v20 = vmul.f32 %v1271_v12, %v1646_v21  ;;  %1286 = vrsqrt.f32 %v1678_v48 }
 0x24d   : > { %v1275_v10 = vpop.eup %1274  ;;  %v929_v11 = vmul.f32 %v1273_v8, %v1690_v4  ;;  %v897_v6 = vadd.f32 1e-06, %v839_v19  ;;  %v810_v15 = vand.u32 2147483648, %v1678_v48  ;;  %vm814_vm7 = vcmp.eq.f32.partialorder %v1707_v29, inf }
 0x24e   : > { %1288 = vrcp.f32 %v890_v17  ;;  %v843_v31 = vsel %vm842_vm15, %v1646_v21, %v841_v20  ;;  %v820_v33 = vmul.f32 %v1275_v10, %v1648_v22  ;;  %v760_v1 = vpop.xlane.xlu1 %759  ;;  %v1764_v17 = vmul.f32 0.032258064, %v758_v0 }
 0x24f   : > { %v945_v40 = vmul.f32 %v929_v11, %v1526_v49  ;;  %1290 = vrcp.f32 %v897_v6  ;;  %v846_v24 = vsel %vm844_vm0, %v845_v7, %v843_v31  ;;  %vm816_vm8 = vcmp.eq.f32.partialorder %v1707_v29, 0.0 }
 0x250   : > { %v1277_v41 = vpop.eup %1276  ;;  %v898_v43 = vadd.f32 1e-06, %v846_v24  ;;  %v822_v44 = vsel %vm821_vm1, %v1648_v22, %v820_v33  ;;  %1292 = vrsqrt.f32 %v1707_v29  ;;  %v817_v24 = vand.u32 2147483648, %v1707_v29 }
 0x251   : > { %v1279_v49 = vpop.eup %1278  ;;  %v967_v21 = vadd.f32 %v1712_v9, %v945_v40  ;;  %v930_v45 = vmul.f32 %v1277_v41, %v1690_v4  ;;  %v825_v46 = vsel %vm823_vm2, %v824_v35, %v822_v44  ;;  %vm863_vm9 = vcmp.eq.f32.partialorder %v1722_v25, inf }
 0x252   : > { %v1281_v26 = vpop.eup %1280  ;;  %v937_v27 = vmul.f32 %v1279_v49, %v1690_v4  ;;  %1294 = vrcp.f32 %v898_v43  ;;  %v895_v54 = vadd.f32 1e-06, %v825_v46  ;;  %vm865_vm10 = vcmp.eq.f32.partialorder %v1722_v25, 0.0 }
 0x253   : > { %983 = vst [vmem:[%s1729_s20 + $0x10] sm:$0xff] %v967_v21  ;;  %v946_v22 = vmul.f32 %v930_v45, %v1538_v56  ;;  %v827_v55 = vmul.f32 %v1281_v26, %v1666_v52  ;;  %1296 = vrsqrt.f32 %v1722_v25  ;;  %vm870_vm11 = vcmp.eq.f32.partialorder %v1736_v51, inf }
 0x254   : > { %v1283_v32 = vpop.eup %1282  ;;  %v953_v57 = vmul.f32 %v937_v27, %v1534_v37  ;;  %1298 = vrcp.f32 %v895_v54  ;;  %v866_v54 = vand.u32 2147483648, %v1722_v25  ;;  %vm872_vm12 = vcmp.eq.f32.partialorder %v1736_v51, 0.0 }
 0x255   : > { %v1285_v58 = vpop.eup %1284  ;;  %v968_v60 = vadd.f32 %v1712_v9, %v946_v22  ;;  %v938_v56 = vmul.f32 %v1283_v32, %v1690_v4  ;;  %v829_v63 = vsel %vm828_vm3, %v1666_v52, %v827_v55  ;;  %1300 = vrsqrt.f32 %v1736_v51 }
 0x256   : > { %v1287_v61 = vpop.eup %1286  ;;  %v975_v37 = vadd.f32 %v1712_v9, %v953_v57  ;;  %v927_v34 = vmul.f32 %v1285_v58, %v1690_v4  ;;  %v832_v62 = vsel %vm830_vm4, %v831_v47, %v829_v63  ;;  %v1766_v52 = vmul.f32 0.032258064, %v760_v1 }
 0x257   : > { %984 = vst [vmem:[%s1729_s20 + $0x18] sm:$0xff] %v968_v60  ;;  %v954_v3 = vmul.f32 %v938_v56, %v1552_v2  ;;  %v896_v12 = vadd.f32 1e-06, %v832_v62  ;;  %v806_v13 = vmul.f32 %v1287_v61, %v1678_v48  ;;  %v873_v55 = vand.u32 2147483648, %v1736_v51 }
 0x258   : > { %v1289_v7 = vpop.eup %1288  ;;  %991 = vst [vmem:[%s1729_s20 + $0x50] sm:$0xff] %v975_v37  ;;  %v943_v8 = vmul.f32 %v927_v34, %v1548_v59  ;;  %vm877_vm13 = vcmp.eq.f32.partialorder %v1764_v17, inf  ;;  %vm879_vm14 = vcmp.eq.f32.partialorder %v1764_v17, 0.0  ;;  %vm884_vm15 = vcmp.eq.f32.partialorder %v1766_v52, inf }
 0x259   : > { %v1291_v19 = vpop.eup %1290  ;;  %v976_v2 = vadd.f32 %v1712_v9, %v954_v3  ;;  %v928_v20 = vmul.f32 %v1289_v7, %v1690_v4  ;;  %1302 = vrcp.f32 %v896_v12  ;;  %v808_v28 = vsel %vm807_vm5, %v1678_v48, %v806_v13 }
 0x25a   : > { %v1293_v10 = vpop.eup %1292  ;;  %v965_v59 = vadd.f32 %v1712_v9, %v943_v8  ;;  %v935_v11 = vmul.f32 %v1291_v19, %v1690_v4  ;;  %v811_v6 = vsel %vm809_vm6, %v810_v15, %v808_v28  ;;  %1304 = vrsqrt.f32 %v1764_v17 }
 0x25b   : > { %992 = vst [vmem:[%s1729_s20 + $0x58] sm:$0xff] %v976_v2  ;;  %v944_v31 = vmul.f32 %v928_v20, %v1566_v14  ;;  %v893_v33 = vadd.f32 1e-06, %v811_v6  ;;  %v813_v35 = vmul.f32 %v1293_v10, %v1707_v29  ;;  %1306 = vrsqrt.f32 %v1766_v52 }
 0x25c   : > { %v1295_v36 = vpop.eup %1294  ;;  %981 = vst [vmem:[%s1729_s20] sm:$0xff] %v965_v59  ;;  %v951_v40 = vmul.f32 %v935_v11, %v1562_v5  ;;  %v887_v15 = vand.u32 2147483648, %v1766_v52  ;;  %vm886_vm0 = vcmp.eq.f32.partialorder %v1766_v52, 0.0 }
 0x25d   : > { %v1297_v48 = vpop.eup %1296  ;;  %v966_v14 = vadd.f32 %v1712_v9, %v944_v31  ;;  %v936_v41 = vmul.f32 %v1295_v36, %v1690_v4  ;;  %1308 = vrcp.f32 %v893_v33  ;;  %v815_v43 = vsel %vm814_vm7, %v1707_v29, %v813_v35 }
 0x25e   : > { %v1299_v44 = vpop.eup %1298  ;;  %v973_v5 = vadd.f32 %v1712_v9, %v951_v40  ;;  %v818_v49 = vsel %vm816_vm8, %v817_v24, %v815_v43  ;;  %v862_v21 = vmul.f32 %v1297_v48, %v1722_v25 }
 0x25f   : > { %v1301_v45 = vpop.eup %1300  ;;  %982 = vst [vmem:[%s1729_s20 + $0x8] sm:$0xff] %v966_v14  ;;  %v952_v46 = vmul.f32 %v936_v41, %v1576_v18  ;;  %v933_v26 = vmul.f32 %v1299_v44, %v1690_v4  ;;  %v894_v27 = vadd.f32 1e-06, %v818_v49 }
 0x260   : > { %989 = vst [vmem:[%s1729_s20 + $0x40] sm:$0xff] %v973_v5  ;;  %v864_v29 = vsel %vm863_vm9, %v1722_v25, %v862_v21  ;;  %v869_v22 = vmul.f32 %v1301_v45, %v1736_v51 }
 0x261   : > { %v974_v18 = vadd.f32 %v1712_v9, %v952_v46  ;;  %v949_v32 = vmul.f32 %v933_v26, %v1580_v23  ;;  %1310 = vrcp.f32 %v894_v27  ;;  %v867_v57 = vsel %vm865_vm10, %v866_v54, %v864_v29 }
 0x262   : > { %v901_v47 = vadd.f32 1e-06, %v867_v57  ;;  %v871_v58 = vsel %vm870_vm11, %v1736_v51, %v869_v22  ;;  %v880_v51 = vand.u32 2147483648, %v1764_v17 }
 0x263   : > { %v1303_v60 = vpop.eup %1302  ;;  %990 = vst [vmem:[%s1729_s20 + $0x48] sm:$0xff] %v974_v18  ;;  %v971_v25 = vadd.f32 %v1712_v9, %v949_v32  ;;  %v874_v56 = vsel %vm872_vm12, %v873_v55, %v871_v58 }
 0x264   : > { %v1305_v63 = vpop.eup %1304  ;;  %v934_v0 = vmul.f32 %v1303_v60, %v1690_v4  ;;  %1312 = vrcp.f32 %v901_v47  ;;  %v902_v1 = vadd.f32 1e-06, %v874_v56 }
 0x265   : > { %987 = vst [vmem:[%s1729_s20 + $0x30] sm:$0xff] %v971_v25  ;;  %v876_v23 = vmul.f32 %v1305_v63, %v1764_v17  ;;  %v1307_v61 = vpop.eup %1306 }
 0x266   : > { %v950_v37 = vmul.f32 %v934_v0, %v1590_v30  ;;  %1314 = vrcp.f32 %v902_v1  ;;  %v883_v3 = vmul.f32 %v1307_v61, %v1766_v52 }
 0x267   : > { %v1309_v34 = vpop.eup %1308  ;;  %v878_v62 = vsel %vm877_vm13, %v1764_v17, %v876_v23 }
 0x268   : > { %v972_v12 = vadd.f32 %v1712_v9, %v950_v37  ;;  %v931_v13 = vmul.f32 %v1309_v34, %v1690_v4  ;;  %v881_v30 = vsel %vm879_vm14, %v880_v51, %v878_v62  ;;  %v885_v8 = vsel %vm884_vm15, %v1766_v52, %v883_v3 }
 0x269   : > { %v903_v7 = vadd.f32 1e-06, %v881_v30  ;;  %v888_v19 = vsel %vm886_vm0, %v887_v15, %v885_v8 }
 0x26a   : > { %988 = vst [vmem:[%s1729_s20 + $0x38] sm:$0xff] %v972_v12  ;;  %v947_v17 = vmul.f32 %v931_v13, %v1594_v39  ;;  %v904_v20 = vadd.f32 1e-06, %v888_v19 }
 0x26b   : > { %v1311_v2 = vpop.eup %1310  ;;  %1316 = vrcp.f32 %v903_v7 }
 0x26c   : > { %v969_v28 = vadd.f32 %v1712_v9, %v947_v17  ;;  %v932_v10 = vmul.f32 %v1311_v2, %v1690_v4  ;;  %1318 = vrcp.f32 %v904_v20 }
 0x26e   : > { %v1313_v59 = vpop.eup %1312  ;;  %985 = vst [vmem:[%s1729_s20 + $0x20] sm:$0xff] %v969_v28  ;;  %v948_v11 = vmul.f32 %v932_v10, %v1604_v42 }
 0x26f   : > { %v939_v52 = vmul.f32 %v1313_v59, %v1690_v4 }
 0x270   : > { %v1315_v6 = vpop.eup %1314  ;;  %v970_v39 = vadd.f32 %v1712_v9, %v948_v11 }
 0x271   : > { %v955_v31 = vmul.f32 %v939_v52, %v1608_v50  ;;  %v940_v33 = vmul.f32 %v1315_v6, %v1690_v4 }
 0x272   : > { %986 = vst [vmem:[%s1729_s20 + $0x28] sm:$0xff] %v970_v39 }
 0x273   : > { %v977_v35 = vadd.f32 %v1712_v9, %v955_v31  ;;  %v956_v36 = vmul.f32 %v940_v33, %v1618_v38 }
 0x275   : > { %v1317_v40 = vpop.eup %1316  ;;  %993 = vst [vmem:[%s1729_s20 + $0x60] sm:$0xff] %v977_v35  ;;  %v978_v42 = vadd.f32 %v1712_v9, %v956_v36 }
 0x276   : > { %v941_v24 = vmul.f32 %v1317_v40, %v1690_v4  ;;  %v1319_v48 = vpop.eup %1318 }
 0x277   : > { %994 = vst [vmem:[%s1729_s20 + $0x68] sm:$0xff] %v978_v42  ;;  %v942_v50 = vmul.f32 %v1319_v48, %v1690_v4 }
 0x278   : > { %v957_v14 = vmul.f32 %v941_v24, %v1622_v53 }
 0x279   : > { %v958_v43 = vmul.f32 %v942_v50, %v1630_v16 }
 0x27a   : > { %v979_v41 = vadd.f32 %v1712_v9, %v957_v14 }
 0x27b   : > { %v980_v44 = vadd.f32 %v1712_v9, %v958_v43 }
 0x27c   : > { %995 = vst [vmem:[%s1729_s20 + $0x70] sm:$0xff] %v979_v41 }
 0x27d   : > { %996 = vst [vmem:[%s1729_s20 + $0x78] sm:$0xff] %v980_v44 }
 0x27e PF: > { %s16_s23 = sadd.s32 1, %s1342_s23   ;;  %s1867_s21 = smov %s1338_s22 }
 0x27f   : > { %p13_p5 = scmp.ge.s32.totalorder %s16_s23, 4   ;;  %s1868_s22 = smov %s1870_s24 }
 0x281   :  { %15 = sbr.rel (!%p13_p5) target bundleno = 2 (0x2), region = 80 }

</bundles_post_ra>
